<compile_context>
chip_gen: v7x
topology: tpu7x:2x2x1
jax: 0.10.0
libtpu: 0.0.40
codegen_flags: <defaults>
</compile_context>

<pallas_src>
import functools

import jax
import jax.numpy as jnp
from jax import lax
from jax.experimental import pallas as pl
from jax.experimental.pallas import tpu as pltpu


def _round_up(n, m):
    return ((n + m - 1) // m) * m


def _pack_for(d):
    """How many rows we lane-pack into one 128-lane vreg row."""
    if d <= 128 and 128 % d == 0:
        return 128 // d
    return 1


# --------------------------------------------------------------------------
# Pallas kernel: one CrossTransformerEncoder forward over a tile of lane-packed
# rows (pack rows per vreg row, PD = pack*D lanes). Weights arrive pre-fused,
# block-diagonal replicated, bf16:
#   wa  = [Wq_bd | W1x_bd]              (PD, 3*PD)
#   wb  = [Wk_bd | (Wv@Wm)_bd]          (PD, 2*PD)
#   w1m = (diag(g1)@W1_msg)_bd          (PD, 2*PD)
#   w2  = W2_bd                         (2*PD, PD)
#   b1  = tiled (b1 @ W1_msg)           (1, 2*PD)   f32
#   ln2 = [g2 tiled; b2 tiled]          (2, PD)     f32
#   mseg: block-ones segment-sum matrix (PD, PD)    bf16
# --------------------------------------------------------------------------
def encoder_kernel(gid_ref,                      # scalar-prefetch (index_maps only)
                   x_ref, s_ref, mseg_ref,
                   wa_ref, wb_ref, w1m_ref, w2_ref, b1_ref, ln2_ref,
                   out_ref, *, inv_d):
    del gid_ref
    pd = x_ref.shape[-1]

    x = x_ref[...]                               # [tm, PD] bf16 (query side, packed)
    s = s_ref[...]                               # [tm, PD] bf16 (key/value side)
    mseg = mseg_ref[...]                         # [PD, PD] bf16 block-ones

    # fused block-diagonal projections (MXU, bf16 in / f32 accumulate, K = PD)
    qx = jnp.dot(x, wa_ref[...], preferred_element_type=jnp.float32)   # [tm, 3PD]
    kv = jnp.dot(s, wb_ref[...], preferred_element_type=jnp.float32)   # [tm, 2PD]
    q, xw1 = qx[:, :pd], qx[:, pd:]              # vreg-aligned splits (128 multiple)
    k, vm = kv[:, :pd], kv[:, pd:]               # vm already includes the merge map

    # linear attention, seq length 1: feature map elu(.) + 1 (f32 VPU/EUP)
    qf = jnp.where(q > 0, q + 1.0, jnp.exp(jnp.minimum(q, 0.0)))
    kf = jnp.where(k > 0, k + 1.0, jnp.exp(jnp.minimum(k, 0.0)))
    # per-original-row (32-lane segment) sum, broadcast back within the segment
    qk = jnp.dot((qf * kf).astype(jnp.bfloat16), mseg,
                 preferred_element_type=jnp.float32)                   # [tm, PD]
    # merge is folded into vm; the per-row scalar commutes with the linear map
    msg = vm * (qk * pl.reciprocal(qk + 1e-6, approx=True))            # [tm, PD]

    # LayerNorm1 (affine folded into w1m / b1): segmented mean / E[x^2]
    msum = jnp.dot(msg.astype(jnp.bfloat16), mseg,
                   preferred_element_type=jnp.float32)
    m2sum = jnp.dot((msg * msg).astype(jnp.bfloat16), mseg,
                    preferred_element_type=jnp.float32)
    mu1 = msum * inv_d
    var1 = jnp.maximum(m2sum * inv_d - mu1 * mu1, 0.0)
    msg_n = (msg - mu1) * lax.rsqrt(var1 + 1e-5)

    # MLP on concat([x, msg_ln]) without the concat:
    #   h1 = relu(x@W1x + msg_n@(g1*W1m) + b1@W1m)
    h1 = jnp.maximum(
        xw1 + jnp.dot(msg_n.astype(jnp.bfloat16), w1m_ref[...],
                      preferred_element_type=jnp.float32) + b1_ref[...], 0.0)
    h2 = jnp.dot(h1.astype(jnp.bfloat16), w2_ref[...],
                 preferred_element_type=jnp.float32)                   # [tm, PD]

    # LayerNorm2 (segmented)
    hsum = jnp.dot(h2.astype(jnp.bfloat16), mseg,
                   preferred_element_type=jnp.float32)
    h2sum = jnp.dot((h2 * h2).astype(jnp.bfloat16), mseg,
                    preferred_element_type=jnp.float32)
    mu2 = hsum * inv_d
    var2 = jnp.maximum(h2sum * inv_d - mu2 * mu2, 0.0)
    h2n = (h2 - mu2) * lax.rsqrt(var2 + 1e-5) * ln2_ref[0:1, :] + ln2_ref[1:2, :]

    # residual (f32) -> lane-dense f32 store
    out_ref[...] = (x.astype(jnp.float32) + h2n).astype(out_ref.dtype)


# --------------------------------------------------------------------------
# Parameter fusion: fold merge into value proj, fold LN1 affine into the MLP,
# then replicate block-diagonally for the lane-packed layout.
# --------------------------------------------------------------------------
def _fuse_params(params, pack):
    wq, wk, wv, wm, g1, b1, w1, w2, g2, b2 = params
    D = wq.shape[0]
    g1v, b1v = g1.reshape(-1), b1.reshape(-1)

    wvm = wv @ wm                                  # merge folded into value proj
    w1x = w1[:D, :]                                # (D, 2D) x-half of MLP layer 1
    w1m = g1v[:, None] * w1[D:, :]                 # (D, 2D) msg-half, LN1 gamma folded
    b1f = b1v[None, :] @ w1[D:, :]                 # (1, 2D)  LN1 beta folded

    PD = pack * D
    wa = jnp.zeros((PD, 3 * PD), jnp.float32)
    wb = jnp.zeros((PD, 2 * PD), jnp.float32)
    w1m_bd = jnp.zeros((PD, 2 * PD), jnp.float32)
    w2_bd = jnp.zeros((2 * PD, PD), jnp.float32)
    for j in range(pack):
        r1 = slice(j * D, (j + 1) * D)
        r2 = slice(j * 2 * D, (j + 1) * 2 * D)
        wa = wa.at[r1, j * D:(j + 1) * D].set(wq)
        wa = wa.at[r1, PD + j * 2 * D:PD + (j + 1) * 2 * D].set(w1x)
        wb = wb.at[r1, j * D:(j + 1) * D].set(wk)
        wb = wb.at[r1, PD + j * D:PD + (j + 1) * D].set(wvm)
        w1m_bd = w1m_bd.at[r1, r2].set(w1m)
        w2_bd = w2_bd.at[r2, j * D:(j + 1) * D].set(w2)

    bias1 = jnp.tile(b1f, (1, pack))                                   # (1, 2*PD)
    ln2 = jnp.concatenate([jnp.tile(g2.reshape(1, D), (1, pack)),
                           jnp.tile(b2.reshape(1, D), (1, pack))], 0)  # (2, PD)
    return (wa.astype(jnp.bfloat16), wb.astype(jnp.bfloat16),
            w1m_bd.astype(jnp.bfloat16), w2_bd.astype(jnp.bfloat16),
            bias1.astype(jnp.float32), ln2.astype(jnp.float32))


def prepare_group_weights(param_list, d_model):
    """Fuse + block-diag-pack params for each group and stack along a group axis."""
    pack = _pack_for(d_model)
    fused = [_fuse_params(p, pack) for p in param_list]
    return tuple(jnp.stack([f[i] for f in fused], axis=0) for i in range(6))


def _segment_sum_matrix(d, pack):
    """Block-diagonal matrix of ones: z @ M gives each lane its 32-lane segment sum."""
    return jnp.kron(jnp.eye(pack, dtype=jnp.float32),
                    jnp.ones((d, d), jnp.float32)).astype(jnp.bfloat16)


# --------------------------------------------------------------------------
# Grouped encoder call: one pallas_call for G independent groups of rows, each
# group with its own (block-diag packed) parameter set. Rows are gathered from a
# single node table with padded *index* arrays (no row pad/concat round trips).
# --------------------------------------------------------------------------
def cross_encoder_grouped(table, idx_x_list, idx_s_list, stacked_w, *, tm=256):
    G = stacked_w[0].shape[0]
    assert len(idx_x_list) == len(idx_s_list) == G
    D = table.shape[1]
    PD = stacked_w[0].shape[1]
    pack = PD // D
    assert pack * D == PD

    counts = [int(ix.shape[0]) for ix in idx_x_list]
    max_packed = max(1, max(-(-n // pack) for n in counts))
    tm_eff = min(tm, _round_up(max_packed, 8))
    if G == 1:
        # v7x: try to give both TensorCores at least one grid step
        tm_eff = min(tm_eff, max(8, _round_up(-(-max_packed // 2), 8)))
    rows_blk = pack * tm_eff          # original rows per grid step

    ix_parts, is_parts, gid_list, sizes = [], [], [], []
    for gi, (ix, isx) in enumerate(zip(idx_x_list, idx_s_list)):
        n = int(ix.shape[0])
        p = max(_round_up(n, rows_blk), rows_blk)
        sizes.append((n, p))
        ix_parts.append(jnp.pad(ix.astype(jnp.int32), (0, p - n)))
        is_parts.append(jnp.pad(isx.astype(jnp.int32), (0, p - n)))
        gid_list += [gi] * (p // rows_blk)

    IX = jnp.concatenate(ix_parts)
    IS = jnp.concatenate(is_parts)
    gid = jnp.asarray(gid_list, dtype=jnp.int32)

    # one gather per stream from the bf16 node table, lane-packed (free reshape)
    tbl = table.astype(jnp.bfloat16)
    X = jnp.take(tbl, IX, axis=0).reshape(-1, PD)
    S = jnp.take(tbl, IS, axis=0).reshape(-1, PD)
    n_packed = X.shape[0]

    mseg = _segment_sum_matrix(D, pack)

    row_spec = pl.BlockSpec((tm_eff, PD), lambda i, g: (i, 0))
    mseg_spec = pl.BlockSpec(mseg.shape, lambda i, g: (0, 0))

    def wspec(t):
        nd = t.ndim - 1
        return pl.BlockSpec(
            (None,) + tuple(t.shape[1:]),
            lambda i, g, _nd=nd: (g[i],) + (0,) * _nd)

    kernel = functools.partial(encoder_kernel, inv_d=1.0 / D)

    out = pl.pallas_call(
        kernel,
        out_shape=jax.ShapeDtypeStruct((n_packed, PD), jnp.float32),
        grid_spec=pltpu.PrefetchScalarGridSpec(
            num_scalar_prefetch=1,
            grid=(n_packed // tm_eff,),
            in_specs=[row_spec, row_spec, mseg_spec] + [wspec(t) for t in stacked_w],
            out_specs=pl.BlockSpec((tm_eff, PD), lambda i, g: (i, 0)),
        ),
        compiler_params=pltpu.CompilerParams(
            dimension_semantics=("parallel",)),
    )(gid, X, S, mseg, *stacked_w)

    rows = out.reshape(-1, D)
    outs, off = [], 0
    for n, p in sizes:
        outs.append(rows[off:off + n])
        off += p
    return outs


# --------------------------------------------------------------------------
# Parameter init (deterministic; mirrors xavier_uniform_ on >1-D params,
# LayerNorm weight=1 / bias=0 since those are 1-D and untouched by init).
# --------------------------------------------------------------------------
def xavier_uniform(key, shape):
    fan_in, fan_out = shape
    bound = (6.0 / (fan_in + fan_out)) ** 0.5
    return jax.random.uniform(key, shape, jnp.float32, -bound, bound)


def init_encoder_params(key, d_model):
    ks = jax.random.split(key, 6)
    wq = xavier_uniform(ks[0], (d_model, d_model))
    wk = xavier_uniform(ks[1], (d_model, d_model))
    wv = xavier_uniform(ks[2], (d_model, d_model))
    wm = xavier_uniform(ks[3], (d_model, d_model))
    g1 = jnp.ones((1, d_model), jnp.float32)
    b1 = jnp.zeros((1, d_model), jnp.float32)
    w1 = xavier_uniform(ks[4], (2 * d_model, 2 * d_model))
    w2 = xavier_uniform(ks[5], (2 * d_model, d_model))
    g2 = jnp.ones((1, d_model), jnp.float32)
    b2 = jnp.zeros((1, d_model), jnp.float32)
    return (wq, wk, wv, wm, g1, b1, w1, w2, g2, b2)


# --------------------------------------------------------------------------
# CrossTransformer.forward(s_u, g, s_g)
#   g   : bipartite user-item graph, node feature 'emb_h' = h  ([M, D], M >= N)
#   s_g : social graph over the N users
# --------------------------------------------------------------------------
def cross_transformer_forward(s_u, h, g_src, g_dst, sg_src, sg_dst, uur_w, vs_w):
    N, _ = s_u.shape
    M = h.shape[0]
    idx_n = jnp.arange(N, dtype=jnp.int32)

    # UUR layer: x = layer(s, s_u), s = h[:N]
    t1 = jnp.concatenate([h[:N], s_u], axis=0)                    # [s | s_u]
    (x,) = cross_encoder_grouped(t1, [idx_n], [N + idx_n], uur_w)

    # combined gather table: [h_n | s] = [x, h[N:], h[:N]]
    t2 = jnp.concatenate([x, h[N:], h[:N]], axis=0)

    # UVR: edge = layer(h_n[g_src], h_n[g_dst])
    # USR: social_edge = layer(s[sg_src], x[sg_dst])   (x == h_n[:N])
    idx_x = [g_src.astype(jnp.int32), M + sg_src.astype(jnp.int32)]
    idx_s = [g_dst.astype(jnp.int32), sg_dst.astype(jnp.int32)]
    edge, social_edge = cross_encoder_grouped(t2, idx_x, idx_s, vs_w)
    return edge, social_edge


# --------------------------------------------------------------------------
# Pure-JAX f32 reference (unfused LoFTR-style encoder) for validation.
# --------------------------------------------------------------------------
def encoder_ref(x, source, params):
    wq, wk, wv, wm, g1, b1, w1, w2, g2, b2 = params
    q = x @ wq
    k = source @ wk
    v = source @ wv
    qf = jax.nn.elu(q) + 1.0
    kf = jax.nn.elu(k) + 1.0
    qk = jnp.sum(qf * kf, axis=-1, keepdims=True)
    msg = v * (qk / (qk + 1e-6))
    msg = msg @ wm
    mu = msg.mean(-1, keepdims=True)
    var = msg.var(-1, keepdims=True)
    msg = (msg - mu) / jnp.sqrt(var + 1e-5) * g1 + b1
    h1 = jax.nn.relu(jnp.concatenate([x, msg], axis=-1) @ w1)
    h2 = h1 @ w2
    mu2 = h2.mean(-1, keepdims=True)
    var2 = h2.var(-1, keepdims=True)
    h2 = (h2 - mu2) / jnp.sqrt(var2 + 1e-5) * g2 + b2
    return x + h2


def cross_transformer_ref(s_u, h, g_src, g_dst, sg_src, sg_dst, params):
    uur, uvr, usr = params
    N, _ = s_u.shape
    s = h[:N]
    x = encoder_ref(s, s_u, uur)
    h_n = jnp.concatenate([x, h[N:]], axis=0)
    edge = encoder_ref(h_n[g_src], h_n[g_dst], uvr)
    social_edge = encoder_ref(s[sg_src], x[sg_dst], usr)
    return edge, social_edge


if __name__ == "__main__":
    d_model = 32          # embedding size
    n_users = 8           # N
    n_nodes = 16          # users + items in graph g
    n_edges = 16          # edges in g
    n_social_edges = 8    # edges in s_g

    key = jax.random.PRNGKey(0)
    k_su, k_h, k_ge1, k_ge2, k_se1, k_se2, k_p1, k_p2, k_p3 = jax.random.split(key, 9)

    s_u = jax.random.normal(k_su, (n_users, d_model), jnp.float32)
    h = jax.random.normal(k_h, (n_nodes, d_model), jnp.float32)   # g.ndata['emb_h']
    g_src = jax.random.randint(k_ge1, (n_edges,), 0, n_nodes)
    g_dst = jax.random.randint(k_ge2, (n_edges,), 0, n_nodes)
    sg_src = jax.random.randint(k_se1, (n_social_edges,), 0, n_users)
    sg_dst = jax.random.randint(k_se2, (n_social_edges,), 0, n_users)

    uur = init_encoder_params(k_p1, d_model)   # UUR
    uvr = init_encoder_params(k_p2, d_model)   # UVR
    usr = init_encoder_params(k_p3, d_model)   # USR

    # fuse / block-diag-pack the weights once, outside the jitted forward
    uur_w = prepare_group_weights([uur], d_model)
    vs_w = prepare_group_weights([uvr, usr], d_model)

    fwd = jax.jit(cross_transformer_forward)
    edge, social_edge = fwd(s_u, h, g_src, g_dst, sg_src, sg_dst, uur_w, vs_w)
    jax.block_until_ready((edge, social_edge))

    assert edge.shape == (n_edges, d_model)
    assert social_edge.shape == (n_social_edges, d_model)
    assert bool(jnp.all(jnp.isfinite(edge)))
    assert bool(jnp.all(jnp.isfinite(social_edge)))

    # validate against the pure-JAX f32 reference (bf16 activations -> loose tol)
    edge_ref, social_ref = cross_transformer_ref(
        s_u, h, g_src, g_dst, sg_src, sg_dst, (uur, uvr, usr))
    err = max(float(jnp.max(jnp.abs(edge - edge_ref))),
              float(jnp.max(jnp.abs(social_edge - social_ref))))
    assert err < 0.3, f"kernel/reference mismatch: max abs err = {err}"

    print("KERNEL_OK")
</pallas_src>

<mosaic_0001>
module attributes {stable_mosaic.version = 11 : i64} {
  func.func @encoder_kernel(%arg0: i32, %arg1: memref<1xi32, #tpu.memory_space<smem>>, %arg2: memref<8x128xbf16, #tpu.memory_space<vmem>>, %arg3: memref<8x128xbf16, #tpu.memory_space<vmem>>, %arg4: memref<128x128xbf16, #tpu.memory_space<vmem>>, %arg5: memref<1x128x384xbf16, #tpu.memory_space<vmem>>, %arg6: memref<1x128x256xbf16, #tpu.memory_space<vmem>>, %arg7: memref<1x128x256xbf16, #tpu.memory_space<vmem>>, %arg8: memref<1x256x128xbf16, #tpu.memory_space<vmem>>, %arg9: memref<1x1x256xf32, #tpu.memory_space<vmem>>, %arg10: memref<1x2x128xf32, #tpu.memory_space<vmem>>, %arg11: memref<8x128xf32, #tpu.memory_space<vmem>>) attributes {dimension_semantics = [#tpu.dimension_semantics<parallel>], iteration_bounds = array<i64: 1>, scalar_prefetch = 1 : i64, scratch_operands = 0 : i64, tpu.core_type = #tpu.core_type<tc>, window_params = [{transform_indices = @transform_0, window_bounds = array<i64: 8, 128>}, {transform_indices = @transform_1, window_bounds = array<i64: 8, 128>}, {pipeline_mode = #tpu.pipeline_mode<synchronous>, transform_indices = @transform_2, window_bounds = array<i64: 128, 128>}, {transform_indices = @transform_3, window_bounds = array<i64: 1, 128, 384>}, {transform_indices = @transform_4, window_bounds = array<i64: 1, 128, 256>}, {transform_indices = @transform_5, window_bounds = array<i64: 1, 128, 256>}, {transform_indices = @transform_6, window_bounds = array<i64: 1, 256, 128>}, {transform_indices = @transform_7, window_bounds = array<i64: 1, 1, 256>}, {transform_indices = @transform_8, window_bounds = array<i64: 1, 2, 128>}, {transform_indices = @transform_9, window_bounds = array<i64: 8, 128>}]} {
    %c0 = arith.constant 0 : index
    %c0_0 = arith.constant 0 : index
    %0 = vector.load %arg2[%c0, %c0_0] : memref<8x128xbf16, #tpu.memory_space<vmem>>, vector<8x128xbf16>
    %c0_1 = arith.constant 0 : index
    %c0_2 = arith.constant 0 : index
    %1 = vector.load %arg3[%c0_1, %c0_2] : memref<8x128xbf16, #tpu.memory_space<vmem>>, vector<8x128xbf16>
    %c0_3 = arith.constant 0 : index
    %c0_4 = arith.constant 0 : index
    %2 = vector.load %arg4[%c0_3, %c0_4] : memref<128x128xbf16, #tpu.memory_space<vmem>>, vector<128x128xbf16>
    %c0_5 = arith.constant 0 : index
    %c0_6 = arith.constant 0 : index
    %c0_7 = arith.constant 0 : index
    %3 = vector.load %arg5[%c0_5, %c0_6, %c0_7] : memref<1x128x384xbf16, #tpu.memory_space<vmem>>, vector<1x128x384xbf16>
    %4 = vector.shape_cast %3 : vector<1x128x384xbf16> to vector<128x384xbf16>
    %cst = arith.constant dense<0.000000e+00> : vector<8x384xf32>
    %5 = tpu.matmul %0, %4, %cst {dimension_numbers = #tpu.dot_dimension_numbers<[1], [0], [0], [1], [0, 0, 1, 1], [], []>} : vector<8x128xbf16>, vector<128x384xbf16>, vector<8x384xf32> -> vector<8x384xf32>
    %c0_8 = arith.constant 0 : index
    %c0_9 = arith.constant 0 : index
    %c0_10 = arith.constant 0 : index
    %6 = vector.load %arg6[%c0_8, %c0_9, %c0_10] : memref<1x128x256xbf16, #tpu.memory_space<vmem>>, vector<1x128x256xbf16>
    %7 = vector.shape_cast %6 : vector<1x128x256xbf16> to vector<128x256xbf16>
    %cst_11 = arith.constant dense<0.000000e+00> : vector<8x256xf32>
    %8 = tpu.matmul %1, %7, %cst_11 {dimension_numbers = #tpu.dot_dimension_numbers<[1], [0], [0], [1], [0, 0, 1, 1], [], []>} : vector<8x128xbf16>, vector<128x256xbf16>, vector<8x256xf32> -> vector<8x256xf32>
    %9 = vector.extract_strided_slice %5 {offsets = [0, 0], sizes = [8, 128], strides = [1, 1]} : vector<8x384xf32> to vector<8x128xf32>
    %10 = vector.extract_strided_slice %5 {offsets = [0, 128], sizes = [8, 256], strides = [1, 1]} : vector<8x384xf32> to vector<8x256xf32>
    %11 = vector.extract_strided_slice %8 {offsets = [0, 0], sizes = [8, 128], strides = [1, 1]} : vector<8x256xf32> to vector<8x128xf32>
    %12 = vector.extract_strided_slice %8 {offsets = [0, 128], sizes = [8, 128], strides = [1, 1]} : vector<8x256xf32> to vector<8x128xf32>
    %cst_12 = arith.constant 0.000000e+00 : f32
    %13 = vector.broadcast %cst_12 : f32 to vector<8x128xf32>
    %14 = arith.cmpf ogt, %9, %13 : vector<8x128xf32>
    %cst_13 = arith.constant 1.000000e+00 : f32
    %15 = vector.broadcast %cst_13 : f32 to vector<8x128xf32>
    %16 = arith.addf %9, %15 : vector<8x128xf32>
    %cst_14 = arith.constant 0.000000e+00 : f32
    %17 = vector.broadcast %cst_14 : f32 to vector<8x128xf32>
    %18 = arith.minimumf %9, %17 : vector<8x128xf32>
    %19 = math.exp %18 : vector<8x128xf32>
    %20 = arith.select %14, %16, %19 : vector<8x128xi1>, vector<8x128xf32>
    %cst_15 = arith.constant 0.000000e+00 : f32
    %21 = vector.broadcast %cst_15 : f32 to vector<8x128xf32>
    %22 = arith.cmpf ogt, %11, %21 : vector<8x128xf32>
    %cst_16 = arith.constant 1.000000e+00 : f32
    %23 = vector.broadcast %cst_16 : f32 to vector<8x128xf32>
    %24 = arith.addf %11, %23 : vector<8x128xf32>
    %cst_17 = arith.constant 0.000000e+00 : f32
    %25 = vector.broadcast %cst_17 : f32 to vector<8x128xf32>
    %26 = arith.minimumf %11, %25 : vector<8x128xf32>
    %27 = math.exp %26 : vector<8x128xf32>
    %28 = arith.select %22, %24, %27 : vector<8x128xi1>, vector<8x128xf32>
    %29 = arith.mulf %20, %28 : vector<8x128xf32>
    %30 = arith.truncf %29 : vector<8x128xf32> to vector<8x128xbf16>
    %cst_18 = arith.constant dense<0.000000e+00> : vector<8x128xf32>
    %31 = tpu.matmul %30, %2, %cst_18 {dimension_numbers = #tpu.dot_dimension_numbers<[1], [0], [0], [1], [0, 0, 1, 1], [], []>} : vector<8x128xbf16>, vector<128x128xbf16>, vector<8x128xf32> -> vector<8x128xf32>
    %cst_19 = arith.constant 9.99999997E-7 : f32
    %32 = vector.broadcast %cst_19 : f32 to vector<8x128xf32>
    %33 = arith.addf %31, %32 : vector<8x128xf32>
    %34 = tpu.reciprocal %33 {approx = true} : vector<8x128xf32> -> vector<8x128xf32>
    %35 = arith.mulf %31, %34 : vector<8x128xf32>
    %36 = arith.mulf %12, %35 : vector<8x128xf32>
    %37 = arith.truncf %36 : vector<8x128xf32> to vector<8x128xbf16>
    %cst_20 = arith.constant dense<0.000000e+00> : vector<8x128xf32>
    %38 = tpu.matmul %37, %2, %cst_20 {dimension_numbers = #tpu.dot_dimension_numbers<[1], [0], [0], [1], [0, 0, 1, 1], [], []>} : vector<8x128xbf16>, vector<128x128xbf16>, vector<8x128xf32> -> vector<8x128xf32>
    %39 = arith.mulf %36, %36 : vector<8x128xf32>
    %40 = arith.truncf %39 : vector<8x128xf32> to vector<8x128xbf16>
    %cst_21 = arith.constant dense<0.000000e+00> : vector<8x128xf32>
    %41 = tpu.matmul %40, %2, %cst_21 {dimension_numbers = #tpu.dot_dimension_numbers<[1], [0], [0], [1], [0, 0, 1, 1], [], []>} : vector<8x128xbf16>, vector<128x128xbf16>, vector<8x128xf32> -> vector<8x128xf32>
    %cst_22 = arith.constant 3.125000e-02 : f32
    %42 = vector.broadcast %cst_22 : f32 to vector<8x128xf32>
    %43 = arith.mulf %38, %42 : vector<8x128xf32>
    %cst_23 = arith.constant 3.125000e-02 : f32
    %44 = vector.broadcast %cst_23 : f32 to vector<8x128xf32>
    %45 = arith.mulf %41, %44 : vector<8x128xf32>
    %46 = arith.mulf %43, %43 : vector<8x128xf32>
    %47 = arith.subf %45, %46 : vector<8x128xf32>
    %cst_24 = arith.constant 0.000000e+00 : f32
    %48 = vector.broadcast %cst_24 : f32 to vector<8x128xf32>
    %49 = arith.maximumf %47, %48 : vector<8x128xf32>
    %50 = arith.subf %36, %43 : vector<8x128xf32>
    %cst_25 = arith.constant 9.99999974E-6 : f32
    %51 = vector.broadcast %cst_25 : f32 to vector<8x128xf32>
    %52 = arith.addf %49, %51 : vector<8x128xf32>
    %53 = math.rsqrt %52 : vector<8x128xf32>
    %54 = arith.mulf %50, %53 : vector<8x128xf32>
    %55 = arith.truncf %54 : vector<8x128xf32> to vector<8x128xbf16>
    %c0_26 = arith.constant 0 : index
    %c0_27 = arith.constant 0 : index
    %c0_28 = arith.constant 0 : index
    %56 = vector.load %arg7[%c0_26, %c0_27, %c0_28] : memref<1x128x256xbf16, #tpu.memory_space<vmem>>, vector<1x128x256xbf16>
    %57 = vector.shape_cast %56 : vector<1x128x256xbf16> to vector<128x256xbf16>
    %cst_29 = arith.constant dense<0.000000e+00> : vector<8x256xf32>
    %58 = tpu.matmul %55, %57, %cst_29 {dimension_numbers = #tpu.dot_dimension_numbers<[1], [0], [0], [1], [0, 0, 1, 1], [], []>} : vector<8x128xbf16>, vector<128x256xbf16>, vector<8x256xf32> -> vector<8x256xf32>
    %59 = arith.addf %10, %58 : vector<8x256xf32>
    %c0_30 = arith.constant 0 : index
    %c0_31 = arith.constant 0 : index
    %c0_32 = arith.constant 0 : index
    %60 = vector.load %arg9[%c0_30, %c0_31, %c0_32] : memref<1x1x256xf32, #tpu.memory_space<vmem>>, vector<1x1x256xf32>
    %61 = vector.shape_cast %60 : vector<1x1x256xf32> to vector<1x256xf32>
    %62 = vector.broadcast %61 : vector<1x256xf32> to vector<8x256xf32>
    %63 = arith.addf %59, %62 : vector<8x256xf32>
    %cst_33 = arith.constant 0.000000e+00 : f32
    %64 = vector.broadcast %cst_33 : f32 to vector<8x256xf32>
    %65 = arith.maximumf %63, %64 : vector<8x256xf32>
    %66 = arith.truncf %65 : vector<8x256xf32> to vector<8x256xbf16>
    %c0_34 = arith.constant 0 : index
    %c0_35 = arith.constant 0 : index
    %c0_36 = arith.constant 0 : index
    %67 = vector.load %arg8[%c0_34, %c0_35, %c0_36] : memref<1x256x128xbf16, #tpu.memory_space<vmem>>, vector<1x256x128xbf16>
    %68 = vector.shape_cast %67 : vector<1x256x128xbf16> to vector<256x128xbf16>
    %cst_37 = arith.constant dense<0.000000e+00> : vector<8x128xf32>
    %69 = tpu.matmul %66, %68, %cst_37 {dimension_numbers = #tpu.dot_dimension_numbers<[1], [0], [0], [1], [0, 0, 1, 1], [], []>} : vector<8x256xbf16>, vector<256x128xbf16>, vector<8x128xf32> -> vector<8x128xf32>
    %70 = arith.truncf %69 : vector<8x128xf32> to vector<8x128xbf16>
    %cst_38 = arith.constant dense<0.000000e+00> : vector<8x128xf32>
    %71 = tpu.matmul %70, %2, %cst_38 {dimension_numbers = #tpu.dot_dimension_numbers<[1], [0], [0], [1], [0, 0, 1, 1], [], []>} : vector<8x128xbf16>, vector<128x128xbf16>, vector<8x128xf32> -> vector<8x128xf32>
    %72 = arith.mulf %69, %69 : vector<8x128xf32>
    %73 = arith.truncf %72 : vector<8x128xf32> to vector<8x128xbf16>
    %cst_39 = arith.constant dense<0.000000e+00> : vector<8x128xf32>
    %74 = tpu.matmul %73, %2, %cst_39 {dimension_numbers = #tpu.dot_dimension_numbers<[1], [0], [0], [1], [0, 0, 1, 1], [], []>} : vector<8x128xbf16>, vector<128x128xbf16>, vector<8x128xf32> -> vector<8x128xf32>
    %cst_40 = arith.constant 3.125000e-02 : f32
    %75 = vector.broadcast %cst_40 : f32 to vector<8x128xf32>
    %76 = arith.mulf %71, %75 : vector<8x128xf32>
    %cst_41 = arith.constant 3.125000e-02 : f32
    %77 = vector.broadcast %cst_41 : f32 to vector<8x128xf32>
    %78 = arith.mulf %74, %77 : vector<8x128xf32>
    %79 = arith.mulf %76, %76 : vector<8x128xf32>
    %80 = arith.subf %78, %79 : vector<8x128xf32>
    %cst_42 = arith.constant 0.000000e+00 : f32
    %81 = vector.broadcast %cst_42 : f32 to vector<8x128xf32>
    %82 = arith.maximumf %80, %81 : vector<8x128xf32>
    %83 = arith.subf %69, %76 : vector<8x128xf32>
    %cst_43 = arith.constant 9.99999974E-6 : f32
    %84 = vector.broadcast %cst_43 : f32 to vector<8x128xf32>
    %85 = arith.addf %82, %84 : vector<8x128xf32>
    %86 = math.rsqrt %85 : vector<8x128xf32>
    %87 = arith.mulf %83, %86 : vector<8x128xf32>
    %c0_44 = arith.constant 0 : index
    %c0_45 = arith.constant 0 : index
    %c0_46 = arith.constant 0 : index
    %88 = vector.load %arg10[%c0_44, %c0_45, %c0_46] : memref<1x2x128xf32, #tpu.memory_space<vmem>>, vector<1x1x128xf32>
    %89 = vector.shape_cast %88 : vector<1x1x128xf32> to vector<1x128xf32>
    %90 = vector.broadcast %89 : vector<1x128xf32> to vector<8x128xf32>
    %91 = arith.mulf %87, %90 : vector<8x128xf32>
    %c0_47 = arith.constant 0 : index
    %c1 = arith.constant 1 : index
    %c0_48 = arith.constant 0 : index
    %92 = vector.load %arg10[%c0_47, %c1, %c0_48] : memref<1x2x128xf32, #tpu.memory_space<vmem>>, vector<1x1x128xf32>
    %93 = vector.shape_cast %92 : vector<1x1x128xf32> to vector<1x128xf32>
    %94 = vector.broadcast %93 : vector<1x128xf32> to vector<8x128xf32>
    %95 = arith.addf %91, %94 : vector<8x128xf32>
    %96 = arith.extf %0 : vector<8x128xbf16> to vector<8x128xf32>
    %97 = arith.addf %96, %95 : vector<8x128xf32>
    %c0_49 = arith.constant 0 : index
    %c0_50 = arith.constant 0 : index
    %98 = vector.load %arg11[%c0_49, %c0_50] : memref<8x128xf32, #tpu.memory_space<vmem>>, vector<8x128xf32>
    tpu.vector_store %arg11[%c0_49, %c0_50], %97 {strides = array<i32>} : memref<8x128xf32, #tpu.memory_space<vmem>>, vector<8x128xf32>,
    return
  }
  func.func @transform_0(%arg0: i32, %arg1: memref<1xi32, #tpu.memory_space<smem>>) -> (i32, i32) {
    %c0_i32 = arith.constant 0 : i32
    %c0_i32_0 = arith.constant 0 : i32
    return %arg0, %c0_i32 : i32, i32
  }
  func.func @transform_1(%arg0: i32, %arg1: memref<1xi32, #tpu.memory_space<smem>>) -> (i32, i32) {
    %c0_i32 = arith.constant 0 : i32
    %c0_i32_0 = arith.constant 0 : i32
    return %arg0, %c0_i32 : i32, i32
  }
  func.func @transform_2(%arg0: i32, %arg1: memref<1xi32, #tpu.memory_space<smem>>) -> (i32, i32) {
    %c0_i32 = arith.constant 0 : i32
    %c0_i32_0 = arith.constant 0 : i32
    %c0_i32_1 = arith.constant 0 : i32
    return %c0_i32, %c0_i32_0 : i32, i32
  }
  func.func @transform_3(%arg0: i32, %arg1: memref<1xi32, #tpu.memory_space<smem>>) -> (i32, i32, i32) {
    %0 = arith.index_cast %arg0 : i32 to index
    %1 = memref.load %arg1[%0] : memref<1xi32, #tpu.memory_space<smem>>
    %c0_i32 = arith.constant 0 : i32
    %c0_i32_0 = arith.constant 0 : i32
    %c0_i32_1 = arith.constant 0 : i32
    return %1, %c0_i32, %c0_i32_0 : i32, i32, i32
  }
  func.func @transform_4(%arg0: i32, %arg1: memref<1xi32, #tpu.memory_space<smem>>) -> (i32, i32, i32) {
    %0 = arith.index_cast %arg0 : i32 to index
    %1 = memref.load %arg1[%0] : memref<1xi32, #tpu.memory_space<smem>>
    %c0_i32 = arith.constant 0 : i32
    %c0_i32_0 = arith.constant 0 : i32
    %c0_i32_1 = arith.constant 0 : i32
    return %1, %c0_i32, %c0_i32_0 : i32, i32, i32
  }
  func.func @transform_5(%arg0: i32, %arg1: memref<1xi32, #tpu.memory_space<smem>>) -> (i32, i32, i32) {
    %0 = arith.index_cast %arg0 : i32 to index
    %1 = memref.load %arg1[%0] : memref<1xi32, #tpu.memory_space<smem>>
    %c0_i32 = arith.constant 0 : i32
    %c0_i32_0 = arith.constant 0 : i32
    %c0_i32_1 = arith.constant 0 : i32
    return %1, %c0_i32, %c0_i32_0 : i32, i32, i32
  }
  func.func @transform_6(%arg0: i32, %arg1: memref<1xi32, #tpu.memory_space<smem>>) -> (i32, i32, i32) {
    %0 = arith.index_cast %arg0 : i32 to index
    %1 = memref.load %arg1[%0] : memref<1xi32, #tpu.memory_space<smem>>
    %c0_i32 = arith.constant 0 : i32
    %c0_i32_0 = arith.constant 0 : i32
    %c0_i32_1 = arith.constant 0 : i32
    return %1, %c0_i32, %c0_i32_0 : i32, i32, i32
  }
  func.func @transform_7(%arg0: i32, %arg1: memref<1xi32, #tpu.memory_space<smem>>) -> (i32, i32, i32) {
    %0 = arith.index_cast %arg0 : i32 to index
    %1 = memref.load %arg1[%0] : memref<1xi32, #tpu.memory_space<smem>>
    %c0_i32 = arith.constant 0 : i32
    %c0_i32_0 = arith.constant 0 : i32
    %c0_i32_1 = arith.constant 0 : i32
    return %1, %c0_i32, %c0_i32_0 : i32, i32, i32
  }
  func.func @transform_8(%arg0: i32, %arg1: memref<1xi32, #tpu.memory_space<smem>>) -> (i32, i32, i32) {
    %0 = arith.index_cast %arg0 : i32 to index
    %1 = memref.load %arg1[%0] : memref<1xi32, #tpu.memory_space<smem>>
    %c0_i32 = arith.constant 0 : i32
    %c0_i32_0 = arith.constant 0 : i32
    %c0_i32_1 = arith.constant 0 : i32
    return %1, %c0_i32, %c0_i32_0 : i32, i32, i32
  }
  func.func @transform_9(%arg0: i32, %arg1: memref<1xi32, #tpu.memory_space<smem>>) -> (i32, i32) {
    %c0_i32 = arith.constant 0 : i32
    %c0_i32_0 = arith.constant 0 : i32
    return %arg0, %c0_i32 : i32, i32
  }
}

module attributes {stable_mosaic.version = 11 : i64} {
  func.func @encoder_kernel(%arg0: i32, %arg1: memref<2xi32, #tpu.memory_space<smem>>, %arg2: memref<8x128xbf16, #tpu.memory_space<vmem>>, %arg3: memref<8x128xbf16, #tpu.memory_space<vmem>>, %arg4: memref<128x128xbf16, #tpu.memory_space<vmem>>, %arg5: memref<1x128x384xbf16, #tpu.memory_space<vmem>>, %arg6: memref<1x128x256xbf16, #tpu.memory_space<vmem>>, %arg7: memref<1x128x256xbf16, #tpu.memory_space<vmem>>, %arg8: memref<1x256x128xbf16, #tpu.memory_space<vmem>>, %arg9: memref<1x1x256xf32, #tpu.memory_space<vmem>>, %arg10: memref<1x2x128xf32, #tpu.memory_space<vmem>>, %arg11: memref<8x128xf32, #tpu.memory_space<vmem>>) attributes {dimension_semantics = [#tpu.dimension_semantics<parallel>], iteration_bounds = array<i64: 2>, scalar_prefetch = 1 : i64, scratch_operands = 0 : i64, tpu.core_type = #tpu.core_type<tc>, window_params = [{transform_indices = @transform_0, window_bounds = array<i64: 8, 128>}, {transform_indices = @transform_1, window_bounds = array<i64: 8, 128>}, {pipeline_mode = #tpu.pipeline_mode<synchronous>, transform_indices = @transform_2, window_bounds = array<i64: 128, 128>}, {transform_indices = @transform_3, window_bounds = array<i64: 1, 128, 384>}, {transform_indices = @transform_4, window_bounds = array<i64: 1, 128, 256>}, {transform_indices = @transform_5, window_bounds = array<i64: 1, 128, 256>}, {transform_indices = @transform_6, window_bounds = array<i64: 1, 256, 128>}, {transform_indices = @transform_7, window_bounds = array<i64: 1, 1, 256>}, {transform_indices = @transform_8, window_bounds = array<i64: 1, 2, 128>}, {transform_indices = @transform_9, window_bounds = array<i64: 8, 128>}]} {
    %c0 = arith.constant 0 : index
    %c0_0 = arith.constant 0 : index
    %0 = vector.load %arg2[%c0, %c0_0] : memref<8x128xbf16, #tpu.memory_space<vmem>>, vector<8x128xbf16>
    %c0_1 = arith.constant 0 : index
    %c0_2 = arith.constant 0 : index
    %1 = vector.load %arg3[%c0_1, %c0_2] : memref<8x128xbf16, #tpu.memory_space<vmem>>, vector<8x128xbf16>
    %c0_3 = arith.constant 0 : index
    %c0_4 = arith.constant 0 : index
    %2 = vector.load %arg4[%c0_3, %c0_4] : memref<128x128xbf16, #tpu.memory_space<vmem>>, vector<128x128xbf16>
    %c0_5 = arith.constant 0 : index
    %c0_6 = arith.constant 0 : index
    %c0_7 = arith.constant 0 : index
    %3 = vector.load %arg5[%c0_5, %c0_6, %c0_7] : memref<1x128x384xbf16, #tpu.memory_space<vmem>>, vector<1x128x384xbf16>
    %4 = vector.shape_cast %3 : vector<1x128x384xbf16> to vector<128x384xbf16>
    %cst = arith.constant dense<0.000000e+00> : vector<8x384xf32>
    %5 = tpu.matmul %0, %4, %cst {dimension_numbers = #tpu.dot_dimension_numbers<[1], [0], [0], [1], [0, 0, 1, 1], [], []>} : vector<8x128xbf16>, vector<128x384xbf16>, vector<8x384xf32> -> vector<8x384xf32>
    %c0_8 = arith.constant 0 : index
    %c0_9 = arith.constant 0 : index
    %c0_10 = arith.constant 0 : index
    %6 = vector.load %arg6[%c0_8, %c0_9, %c0_10] : memref<1x128x256xbf16, #tpu.memory_space<vmem>>, vector<1x128x256xbf16>
    %7 = vector.shape_cast %6 : vector<1x128x256xbf16> to vector<128x256xbf16>
    %cst_11 = arith.constant dense<0.000000e+00> : vector<8x256xf32>
    %8 = tpu.matmul %1, %7, %cst_11 {dimension_numbers = #tpu.dot_dimension_numbers<[1], [0], [0], [1], [0, 0, 1, 1], [], []>} : vector<8x128xbf16>, vector<128x256xbf16>, vector<8x256xf32> -> vector<8x256xf32>
    %9 = vector.extract_strided_slice %5 {offsets = [0, 0], sizes = [8, 128], strides = [1, 1]} : vector<8x384xf32> to vector<8x128xf32>
    %10 = vector.extract_strided_slice %5 {offsets = [0, 128], sizes = [8, 256], strides = [1, 1]} : vector<8x384xf32> to vector<8x256xf32>
    %11 = vector.extract_strided_slice %8 {offsets = [0, 0], sizes = [8, 128], strides = [1, 1]} : vector<8x256xf32> to vector<8x128xf32>
    %12 = vector.extract_strided_slice %8 {offsets = [0, 128], sizes = [8, 128], strides = [1, 1]} : vector<8x256xf32> to vector<8x128xf32>
    %cst_12 = arith.constant 0.000000e+00 : f32
    %13 = vector.broadcast %cst_12 : f32 to vector<8x128xf32>
    %14 = arith.cmpf ogt, %9, %13 : vector<8x128xf32>
    %cst_13 = arith.constant 1.000000e+00 : f32
    %15 = vector.broadcast %cst_13 : f32 to vector<8x128xf32>
    %16 = arith.addf %9, %15 : vector<8x128xf32>
    %cst_14 = arith.constant 0.000000e+00 : f32
    %17 = vector.broadcast %cst_14 : f32 to vector<8x128xf32>
    %18 = arith.minimumf %9, %17 : vector<8x128xf32>
    %19 = math.exp %18 : vector<8x128xf32>
    %20 = arith.select %14, %16, %19 : vector<8x128xi1>, vector<8x128xf32>
    %cst_15 = arith.constant 0.000000e+00 : f32
    %21 = vector.broadcast %cst_15 : f32 to vector<8x128xf32>
    %22 = arith.cmpf ogt, %11, %21 : vector<8x128xf32>
    %cst_16 = arith.constant 1.000000e+00 : f32
    %23 = vector.broadcast %cst_16 : f32 to vector<8x128xf32>
    %24 = arith.addf %11, %23 : vector<8x128xf32>
    %cst_17 = arith.constant 0.000000e+00 : f32
    %25 = vector.broadcast %cst_17 : f32 to vector<8x128xf32>
    %26 = arith.minimumf %11, %25 : vector<8x128xf32>
    %27 = math.exp %26 : vector<8x128xf32>
    %28 = arith.select %22, %24, %27 : vector<8x128xi1>, vector<8x128xf32>
    %29 = arith.mulf %20, %28 : vector<8x128xf32>
    %30 = arith.truncf %29 : vector<8x128xf32> to vector<8x128xbf16>
    %cst_18 = arith.constant dense<0.000000e+00> : vector<8x128xf32>
    %31 = tpu.matmul %30, %2, %cst_18 {dimension_numbers = #tpu.dot_dimension_numbers<[1], [0], [0], [1], [0, 0, 1, 1], [], []>} : vector<8x128xbf16>, vector<128x128xbf16>, vector<8x128xf32> -> vector<8x128xf32>
    %cst_19 = arith.constant 9.99999997E-7 : f32
    %32 = vector.broadcast %cst_19 : f32 to vector<8x128xf32>
    %33 = arith.addf %31, %32 : vector<8x128xf32>
    %34 = tpu.reciprocal %33 {approx = true} : vector<8x128xf32> -> vector<8x128xf32>
    %35 = arith.mulf %31, %34 : vector<8x128xf32>
    %36 = arith.mulf %12, %35 : vector<8x128xf32>
    %37 = arith.truncf %36 : vector<8x128xf32> to vector<8x128xbf16>
    %cst_20 = arith.constant dense<0.000000e+00> : vector<8x128xf32>
    %38 = tpu.matmul %37, %2, %cst_20 {dimension_numbers = #tpu.dot_dimension_numbers<[1], [0], [0], [1], [0, 0, 1, 1], [], []>} : vector<8x128xbf16>, vector<128x128xbf16>, vector<8x128xf32> -> vector<8x128xf32>
    %39 = arith.mulf %36, %36 : vector<8x128xf32>
    %40 = arith.truncf %39 : vector<8x128xf32> to vector<8x128xbf16>
    %cst_21 = arith.constant dense<0.000000e+00> : vector<8x128xf32>
    %41 = tpu.matmul %40, %2, %cst_21 {dimension_numbers = #tpu.dot_dimension_numbers<[1], [0], [0], [1], [0, 0, 1, 1], [], []>} : vector<8x128xbf16>, vector<128x128xbf16>, vector<8x128xf32> -> vector<8x128xf32>
    %cst_22 = arith.constant 3.125000e-02 : f32
    %42 = vector.broadcast %cst_22 : f32 to vector<8x128xf32>
    %43 = arith.mulf %38, %42 : vector<8x128xf32>
    %cst_23 = arith.constant 3.125000e-02 : f32
    %44 = vector.broadcast %cst_23 : f32 to vector<8x128xf32>
    %45 = arith.mulf %41, %44 : vector<8x128xf32>
    %46 = arith.mulf %43, %43 : vector<8x128xf32>
    %47 = arith.subf %45, %46 : vector<8x128xf32>
    %cst_24 = arith.constant 0.000000e+00 : f32
    %48 = vector.broadcast %cst_24 : f32 to vector<8x128xf32>
    %49 = arith.maximumf %47, %48 : vector<8x128xf32>
    %50 = arith.subf %36, %43 : vector<8x128xf32>
    %cst_25 = arith.constant 9.99999974E-6 : f32
    %51 = vector.broadcast %cst_25 : f32 to vector<8x128xf32>
    %52 = arith.addf %49, %51 : vector<8x128xf32>
    %53 = math.rsqrt %52 : vector<8x128xf32>
    %54 = arith.mulf %50, %53 : vector<8x128xf32>
    %55 = arith.truncf %54 : vector<8x128xf32> to vector<8x128xbf16>
    %c0_26 = arith.constant 0 : index
    %c0_27 = arith.constant 0 : index
    %c0_28 = arith.constant 0 : index
    %56 = vector.load %arg7[%c0_26, %c0_27, %c0_28] : memref<1x128x256xbf16, #tpu.memory_space<vmem>>, vector<1x128x256xbf16>
    %57 = vector.shape_cast %56 : vector<1x128x256xbf16> to vector<128x256xbf16>
    %cst_29 = arith.constant dense<0.000000e+00> : vector<8x256xf32>
    %58 = tpu.matmul %55, %57, %cst_29 {dimension_numbers = #tpu.dot_dimension_numbers<[1], [0], [0], [1], [0, 0, 1, 1], [], []>} : vector<8x128xbf16>, vector<128x256xbf16>, vector<8x256xf32> -> vector<8x256xf32>
    %59 = arith.addf %10, %58 : vector<8x256xf32>
    %c0_30 = arith.constant 0 : index
    %c0_31 = arith.constant 0 : index
    %c0_32 = arith.constant 0 : index
    %60 = vector.load %arg9[%c0_30, %c0_31, %c0_32] : memref<1x1x256xf32, #tpu.memory_space<vmem>>, vector<1x1x256xf32>
    %61 = vector.shape_cast %60 : vector<1x1x256xf32> to vector<1x256xf32>
    %62 = vector.broadcast %61 : vector<1x256xf32> to vector<8x256xf32>
    %63 = arith.addf %59, %62 : vector<8x256xf32>
    %cst_33 = arith.constant 0.000000e+00 : f32
    %64 = vector.broadcast %cst_33 : f32 to vector<8x256xf32>
    %65 = arith.maximumf %63, %64 : vector<8x256xf32>
    %66 = arith.truncf %65 : vector<8x256xf32> to vector<8x256xbf16>
    %c0_34 = arith.constant 0 : index
    %c0_35 = arith.constant 0 : index
    %c0_36 = arith.constant 0 : index
    %67 = vector.load %arg8[%c0_34, %c0_35, %c0_36] : memref<1x256x128xbf16, #tpu.memory_space<vmem>>, vector<1x256x128xbf16>
    %68 = vector.shape_cast %67 : vector<1x256x128xbf16> to vector<256x128xbf16>
    %cst_37 = arith.constant dense<0.000000e+00> : vector<8x128xf32>
    %69 = tpu.matmul %66, %68, %cst_37 {dimension_numbers = #tpu.dot_dimension_numbers<[1], [0], [0], [1], [0, 0, 1, 1], [], []>} : vector<8x256xbf16>, vector<256x128xbf16>, vector<8x128xf32> -> vector<8x128xf32>
    %70 = arith.truncf %69 : vector<8x128xf32> to vector<8x128xbf16>
    %cst_38 = arith.constant dense<0.000000e+00> : vector<8x128xf32>
    %71 = tpu.matmul %70, %2, %cst_38 {dimension_numbers = #tpu.dot_dimension_numbers<[1], [0], [0], [1], [0, 0, 1, 1], [], []>} : vector<8x128xbf16>, vector<128x128xbf16>, vector<8x128xf32> -> vector<8x128xf32>
    %72 = arith.mulf %69, %69 : vector<8x128xf32>
    %73 = arith.truncf %72 : vector<8x128xf32> to vector<8x128xbf16>
    %cst_39 = arith.constant dense<0.000000e+00> : vector<8x128xf32>
    %74 = tpu.matmul %73, %2, %cst_39 {dimension_numbers = #tpu.dot_dimension_numbers<[1], [0], [0], [1], [0, 0, 1, 1], [], []>} : vector<8x128xbf16>, vector<128x128xbf16>, vector<8x128xf32> -> vector<8x128xf32>
    %cst_40 = arith.constant 3.125000e-02 : f32
    %75 = vector.broadcast %cst_40 : f32 to vector<8x128xf32>
    %76 = arith.mulf %71, %75 : vector<8x128xf32>
    %cst_41 = arith.constant 3.125000e-02 : f32
    %77 = vector.broadcast %cst_41 : f32 to vector<8x128xf32>
    %78 = arith.mulf %74, %77 : vector<8x128xf32>
    %79 = arith.mulf %76, %76 : vector<8x128xf32>
    %80 = arith.subf %78, %79 : vector<8x128xf32>
    %cst_42 = arith.constant 0.000000e+00 : f32
    %81 = vector.broadcast %cst_42 : f32 to vector<8x128xf32>
    %82 = arith.maximumf %80, %81 : vector<8x128xf32>
    %83 = arith.subf %69, %76 : vector<8x128xf32>
    %cst_43 = arith.constant 9.99999974E-6 : f32
    %84 = vector.broadcast %cst_43 : f32 to vector<8x128xf32>
    %85 = arith.addf %82, %84 : vector<8x128xf32>
    %86 = math.rsqrt %85 : vector<8x128xf32>
    %87 = arith.mulf %83, %86 : vector<8x128xf32>
    %c0_44 = arith.constant 0 : index
    %c0_45 = arith.constant 0 : index
    %c0_46 = arith.constant 0 : index
    %88 = vector.load %arg10[%c0_44, %c0_45, %c0_46] : memref<1x2x128xf32, #tpu.memory_space<vmem>>, vector<1x1x128xf32>
    %89 = vector.shape_cast %88 : vector<1x1x128xf32> to vector<1x128xf32>
    %90 = vector.broadcast %89 : vector<1x128xf32> to vector<8x128xf32>
    %91 = arith.mulf %87, %90 : vector<8x128xf32>
    %c0_47 = arith.constant 0 : index
    %c1 = arith.constant 1 : index
    %c0_48 = arith.constant 0 : index
    %92 = vector.load %arg10[%c0_47, %c1, %c0_48] : memref<1x2x128xf32, #tpu.memory_space<vmem>>, vector<1x1x128xf32>
    %93 = vector.shape_cast %92 : vector<1x1x128xf32> to vector<1x128xf32>
    %94 = vector.broadcast %93 : vector<1x128xf32> to vector<8x128xf32>
    %95 = arith.addf %91, %94 : vector<8x128xf32>
    %96 = arith.extf %0 : vector<8x128xbf16> to vector<8x128xf32>
    %97 = arith.addf %96, %95 : vector<8x128xf32>
    %c0_49 = arith.constant 0 : index
    %c0_50 = arith.constant 0 : index
    %98 = vector.load %arg11[%c0_49, %c0_50] : memref<8x128xf32, #tpu.memory_space<vmem>>, vector<8x128xf32>
    tpu.vector_store %arg11[%c0_49, %c0_50], %97 {strides = array<i32>} : memref<8x128xf32, #tpu.memory_space<vmem>>, vector<8x128xf32>,
    return
  }
  func.func @transform_0(%arg0: i32, %arg1: memref<2xi32, #tpu.memory_space<smem>>) -> (i32, i32) {
    %c0_i32 = arith.constant 0 : i32
    %c0_i32_0 = arith.constant 0 : i32
    return %arg0, %c0_i32 : i32, i32
  }
  func.func @transform_1(%arg0: i32, %arg1: memref<2xi32, #tpu.memory_space<smem>>) -> (i32, i32) {
    %c0_i32 = arith.constant 0 : i32
    %c0_i32_0 = arith.constant 0 : i32
    return %arg0, %c0_i32 : i32, i32
  }
  func.func @transform_2(%arg0: i32, %arg1: memref<2xi32, #tpu.memory_space<smem>>) -> (i32, i32) {
    %c0_i32 = arith.constant 0 : i32
    %c0_i32_0 = arith.constant 0 : i32
    %c0_i32_1 = arith.constant 0 : i32
    return %c0_i32, %c0_i32_0 : i32, i32
  }
  func.func @transform_3(%arg0: i32, %arg1: memref<2xi32, #tpu.memory_space<smem>>) -> (i32, i32, i32) {
    %0 = arith.index_cast %arg0 : i32 to index
    %1 = memref.load %arg1[%0] : memref<2xi32, #tpu.memory_space<smem>>
    %c0_i32 = arith.constant 0 : i32
    %c0_i32_0 = arith.constant 0 : i32
    %c0_i32_1 = arith.constant 0 : i32
    return %1, %c0_i32, %c0_i32_0 : i32, i32, i32
  }
  func.func @transform_4(%arg0: i32, %arg1: memref<2xi32, #tpu.memory_space<smem>>) -> (i32, i32, i32) {
    %0 = arith.index_cast %arg0 : i32 to index
    %1 = memref.load %arg1[%0] : memref<2xi32, #tpu.memory_space<smem>>
    %c0_i32 = arith.constant 0 : i32
    %c0_i32_0 = arith.constant 0 : i32
    %c0_i32_1 = arith.constant 0 : i32
    return %1, %c0_i32, %c0_i32_0 : i32, i32, i32
  }
  func.func @transform_5(%arg0: i32, %arg1: memref<2xi32, #tpu.memory_space<smem>>) -> (i32, i32, i32) {
    %0 = arith.index_cast %arg0 : i32 to index
    %1 = memref.load %arg1[%0] : memref<2xi32, #tpu.memory_space<smem>>
    %c0_i32 = arith.constant 0 : i32
    %c0_i32_0 = arith.constant 0 : i32
    %c0_i32_1 = arith.constant 0 : i32
    return %1, %c0_i32, %c0_i32_0 : i32, i32, i32
  }
  func.func @transform_6(%arg0: i32, %arg1: memref<2xi32, #tpu.memory_space<smem>>) -> (i32, i32, i32) {
    %0 = arith.index_cast %arg0 : i32 to index
    %1 = memref.load %arg1[%0] : memref<2xi32, #tpu.memory_space<smem>>
    %c0_i32 = arith.constant 0 : i32
    %c0_i32_0 = arith.constant 0 : i32
    %c0_i32_1 = arith.constant 0 : i32
    return %1, %c0_i32, %c0_i32_0 : i32, i32, i32
  }
  func.func @transform_7(%arg0: i32, %arg1: memref<2xi32, #tpu.memory_space<smem>>) -> (i32, i32, i32) {
    %0 = arith.index_cast %arg0 : i32 to index
    %1 = memref.load %arg1[%0] : memref<2xi32, #tpu.memory_space<smem>>
    %c0_i32 = arith.constant 0 : i32
    %c0_i32_0 = arith.constant 0 : i32
    %c0_i32_1 = arith.constant 0 : i32
    return %1, %c0_i32, %c0_i32_0 : i32, i32, i32
  }
  func.func @transform_8(%arg0: i32, %arg1: memref<2xi32, #tpu.memory_space<smem>>) -> (i32, i32, i32) {
    %0 = arith.index_cast %arg0 : i32 to index
    %1 = memref.load %arg1[%0] : memref<2xi32, #tpu.memory_space<smem>>
    %c0_i32 = arith.constant 0 : i32
    %c0_i32_0 = arith.constant 0 : i32
    %c0_i32_1 = arith.constant 0 : i32
    return %1, %c0_i32, %c0_i32_0 : i32, i32, i32
  }
  func.func @transform_9(%arg0: i32, %arg1: memref<2xi32, #tpu.memory_space<smem>>) -> (i32, i32) {
    %c0_i32 = arith.constant 0 : i32
    %c0_i32_0 = arith.constant 0 : i32
    return %arg0, %c0_i32 : i32, i32
  }
}

</mosaic_0001>

<bundles_post_ra>
// kernel: cross_transformer_forward.2
= control target key start
LH: loop header
LB: loop body
LE: loop exit
PB: predicated region body
PF: predicated region fallthrough
CT: control target
= control target key end

     0   :  { %v1624_v0 = vmov 0   ;;  %v1625_v1 = vmov 0.0   ;;  %vm1626_vm0 = vmmov 0   ;;  %s1970_s0 = inlined_call_operand.<no memory space> [shape: s32[1], index: 0, kind: input, shape index: {}]   ;;  %s1971_s5 = inlined_call_operand.vmem [shape: bf16[1,128,256], index: 5, kind: input, shape index: {}]   ;;  %s1972_s4 = inlined_call_operand.vmem [shape: bf16[1,128,384], index: 4, kind: input, shape index: {}]   ;;  %s1973_s7 = inlined_call_operand.vmem [shape: bf16[1,256,128], index: 7, kind: input, shape index: {}]   ;;  %s1974_s1 = inlined_call_operand.vmem [shape: bf16[8,128], index: 1, kind: input, shape index: {}]   ;;  %s1975_s2 = inlined_call_operand.vmem [shape: bf16[8,128], index: 2, kind: input, shape index: {}]   ;;  %s1976_s3 = inlined_call_operand.vmem [shape: bf16[128,128], index: 3, kind: input, shape index: {}]   ;;  %s1977_s6 = inlined_call_operand.vmem [shape: bf16[1,128,256], index: 6, kind: input, shape index: {}]   ;;  %s1978_s8 = inlined_call_operand.vmem [shape: f32[1,1,256], index: 8, kind: input, shape index: {}]   ;;  %s1979_s9 = inlined_call_operand.vmem [shape: f32[1,2,128], index: 9, kind: input, shape index: {}]   ;;  %s1980_s10 = inlined_call_operand.vmem [shape: f32[8,128], index: 10, kind: output, shape index: {}]  }
   0x1   :  { %p109_p0 = scmp.lt.s32.totalorder %s1970_s0, 0  ;;  %359 = vmatprep.mubr.bf16.mxu0 %v1624_v0  ;;  %1386 = vmatprep.subr.bf16.mxu1 %v1625_v1  ;;  %v1738_v22 = vld [vmem:[%s1974_s1] sm:$0xf]  ;;  %v1785_v45 = vld [vmem:[%s1976_s3 + $0x8] sm:$0xff]   ;;  %v1798_v46 = vld [vmem:[%s1976_s3 + $0x10] sm:$0xff]  }
   0x2   :  { %v150_v38 = vld [vmem:[%s1975_s2] sm:$0xf]  ;;  %1402 = vmatprep.mubr.msk.bf16.mxu1 %vm1626_vm0, %v1625_v1  ;;  %v1809_v47 = vld [vmem:[%s1976_s3 + $0x18] sm:$0xff]   ;;  %v1827_v49 = vld [vmem:[%s1976_s3 + $0x28] sm:$0xff]  }
   0x3   :  { %s1982_s0 = smov (!%p109_p0, %s1970_s0), 0  ;;  %v1777_v44 = vld [vmem:[%s1976_s3] sm:$0xff]   ;;  %v1836_v50 = vld [vmem:[%s1976_s3 + $0x30] sm:$0xff]   ;;  %v1845_v51 = vld [vmem:[%s1976_s3 + $0x38] sm:$0xff]  }
   0x4   :  { %s1506_s17 = smul.u32 192, %s1982_s0  ;;  %s1694_s18 = sshll.u32 %s1982_s0, 7  ;;  %v1818_v48 = vld [vmem:[%s1976_s3 + $0x20] sm:$0xff]  }
   0x5   :  { %s1700_s21 = scalar_lea.vmem %s1971_s5, %s1694_s18  ;;  %s1730_s25 = scalar_lea.vmem %s1973_s7, %s1694_s18 }
   0x6   :  { %s1705_s24 = scalar_lea.vmem %s1972_s4, %s1506_s17  ;;  %v1536_v21 = vld [vmem:[%s1700_s21 + $0x4] ss:$8 sps:$4 sm:$0xff]   ;;  %v1534_v23 = vld [vmem:[%s1700_s21] ss:$8 sps:$4 sm:$0xff]   ;;  %v1539_v24 = vld [vmem:[%s1700_s21 + $0x14] ss:$8 sps:$4 sm:$0xff]   ;;  %s1875_s4 = scalar_lea.vmem %s1977_s6, %s1694_s18 }
   0x7   :  { %v1510_v2 = vld [vmem:[%s1705_s24 + $0x4] ss:$12 sps:$4 sm:$0xff]   ;;  %v1512_v3 = vld [vmem:[%s1705_s24] ss:$12 sps:$4 sm:$0xff]   ;;  %v1513_v4 = vld [vmem:[%s1705_s24 + $0x1c] ss:$12 sps:$4 sm:$0xff]  }
   0x8   :  { %327 = vmatprep.subr.bf16.mxu0 %v1510_v2  ;;  %v1515_v5 = vld [vmem:[%s1705_s24 + $0x18] ss:$12 sps:$4 sm:$0xff]   ;;  %v1516_v6 = vld [vmem:[%s1705_s24 + $0x34] ss:$12 sps:$4 sm:$0xff]   ;;  %v1518_v7 = vld [vmem:[%s1705_s24 + $0x30] ss:$12 sps:$4 sm:$0xff]  }
   0x9   :  { %328 = vmatpush1.bf16.msra.mxu0 %v1512_v3  ;;  %v1519_v8 = vld [vmem:[%s1705_s24 + $0x4c] ss:$12 sps:$4 sm:$0xff]   ;;  %v1521_v9 = vld [vmem:[%s1705_s24 + $0x48] ss:$12 sps:$4 sm:$0xff]   ;;  %v1522_v10 = vld [vmem:[%s1705_s24 + $0x64] ss:$12 sps:$4 sm:$0xff]  }
   0xa   :  { %329 = vmatprep.subr.bf16.mxu0 %v1513_v4  ;;  %v1524_v11 = vld [vmem:[%s1705_s24 + $0x60] ss:$12 sps:$4 sm:$0xff]   ;;  %v1525_v12 = vld [vmem:[%s1705_s24 + $0x7c] ss:$12 sps:$4 sm:$0xff]   ;;  %v1527_v13 = vld [vmem:[%s1705_s24 + $0x78] ss:$12 sps:$4 sm:$0xff]  }
   0xb   :  { %v1528_v14 = vld [vmem:[%s1705_s24 + $0x94] ss:$12 sps:$4 sm:$0xff]   ;;  %v1530_v15 = vld [vmem:[%s1705_s24 + $0x90] ss:$12 sps:$4 sm:$0xff]   ;;  %v1531_v17 = vld [vmem:[%s1705_s24 + $0xac] ss:$12 sps:$4 sm:$0xff]  }
   0xc   :  { %v1558_v16 = vld [vmem:[%s1705_s24 + $0x8] ss:$12 sps:$4 sm:$0xff]   ;;  %v1559_v18 = vld [vmem:[%s1705_s24 + $0x20] ss:$12 sps:$4 sm:$0xff]   ;;  %v1560_v20 = vld [vmem:[%s1705_s24 + $0x38] ss:$12 sps:$4 sm:$0xff]  }
   0xd   :  { %330 = vmatpush1.bf16.msra.mxu0 %v1515_v5  ;;  %1387 = vmatpush3.bf16.msra.mxu1 %v1558_v16  ;;  %v1533_v19 = vld [vmem:[%s1705_s24 + $0xa8] ss:$12 sps:$4 sm:$0xff]   ;;  %v1537_v25 = vld [vmem:[%s1700_s21 + $0x10] ss:$8 sps:$4 sm:$0xff]   ;;  %v1542_v26 = vld [vmem:[%s1700_s21 + $0x24] ss:$8 sps:$4 sm:$0xff]  }
   0xe   :  { %331 = vmatprep.subr.bf16.mxu0 %v1516_v6  ;;  %1388 = vmatprep.subr.bf16.mxu1 %v1625_v1  ;;  %v1540_v27 = vld [vmem:[%s1700_s21 + $0x20] ss:$8 sps:$4 sm:$0xff]   ;;  %v1545_v28 = vld [vmem:[%s1700_s21 + $0x34] ss:$8 sps:$4 sm:$0xff]   ;;  %v1543_v29 = vld [vmem:[%s1700_s21 + $0x30] ss:$8 sps:$4 sm:$0xff]  }
   0xf   :  { %v1548_v30 = vld [vmem:[%s1700_s21 + $0x44] ss:$8 sps:$4 sm:$0xff]   ;;  %v1546_v31 = vld [vmem:[%s1700_s21 + $0x40] ss:$8 sps:$4 sm:$0xff]   ;;  %v1551_v32 = vld [vmem:[%s1700_s21 + $0x54] ss:$8 sps:$4 sm:$0xff]  }
  0x10   :  { %v1549_v33 = vld [vmem:[%s1700_s21 + $0x50] ss:$8 sps:$4 sm:$0xff]   ;;  %v1554_v34 = vld [vmem:[%s1700_s21 + $0x64] ss:$8 sps:$4 sm:$0xff]   ;;  %v1552_v35 = vld [vmem:[%s1700_s21 + $0x60] ss:$8 sps:$4 sm:$0xff]  }
  0x11   :  { %332 = vmatpush1.bf16.msra.mxu0 %v1518_v7  ;;  %1389 = vmatpush3.bf16.msra.mxu1 %v1559_v18  ;;  %v1557_v36 = vld [vmem:[%s1700_s21 + $0x74] ss:$8 sps:$4 sm:$0xff]   ;;  %v1555_v37 = vld [vmem:[%s1700_s21 + $0x70] ss:$8 sps:$4 sm:$0xff]   ;;  %v1563_v41 = vld [vmem:[%s1705_s24 + $0x80] ss:$12 sps:$4 sm:$0xff]  }
  0x12   :  { %333 = vmatprep.subr.bf16.mxu0 %v1519_v8  ;;  %1390 = vmatprep.subr.bf16.mxu1 %v1625_v1  ;;  %v1561_v39 = vld [vmem:[%s1705_s24 + $0x50] ss:$12 sps:$4 sm:$0xff]   ;;  %v1562_v40 = vld [vmem:[%s1705_s24 + $0x68] ss:$12 sps:$4 sm:$0xff]   ;;  %v1564_v42 = vld [vmem:[%s1705_s24 + $0x98] ss:$12 sps:$4 sm:$0xff]  }
  0x13   :  { %v1565_v43 = vld [vmem:[%s1705_s24 + $0xb0] ss:$12 sps:$4 sm:$0xff]   ;;  %s1223_s6 = sshll.u32 %s1982_s0, 1 }
  0x14   :  { %s140_s26 = scalar_lea.vmem %s1978_s8, %s1223_s6  ;;  %s146_s27 = scalar_lea.vmem %s1979_s9, %s1223_s6 }
  0x15   :  { %334 = vmatpush1.bf16.msra.mxu0 %v1521_v9  ;;  %1391 = vmatpush3.bf16.msra.mxu1 %v1560_v20 }
  0x16   :  { %335 = vmatprep.subr.bf16.mxu0 %v1522_v10  ;;  %1392 = vmatprep.subr.bf16.mxu1 %v1625_v1 }
  0x19   :  { %336 = vmatpush1.bf16.msra.mxu0 %v1524_v11  ;;  %1393 = vmatpush3.bf16.msra.mxu1 %v1561_v39  ;;  %v1597_v39 = vld [vmem:[%s1875_s4 + $0x74] ss:$8 sps:$4 sm:$0xff]  }
  0x1a   :  { %337 = vmatprep.subr.bf16.mxu0 %v1525_v12  ;;  %1394 = vmatprep.subr.bf16.mxu1 %v1625_v1 }
  0x1d   :  { %338 = vmatpush1.bf16.msra.mxu0 %v1527_v13  ;;  %1395 = vmatpush3.bf16.msra.mxu1 %v1562_v40  ;;  %v1595_v40 = vld [vmem:[%s1875_s4 + $0x70] ss:$8 sps:$4 sm:$0xff]  }
  0x1e   :  { %339 = vmatprep.subr.bf16.mxu0 %v1528_v14  ;;  %1396 = vmatprep.subr.bf16.mxu1 %v1625_v1  ;;  %v1576_v14 = vld [vmem:[%s1875_s4 + $0x4] ss:$8 sps:$4 sm:$0xff]  }
  0x21   :  { %340 = vmatpush1.bf16.msra.mxu0 %v1530_v15  ;;  %1397 = vmatpush3.bf16.msra.mxu1 %v1563_v41  ;;  %v1598_v41 = vld [vmem:[%s1730_s25 + $0x40] sm:$0xff]  }
  0x22   :  { %341 = vmatprep.subr.bf16.mxu0 %v1531_v17  ;;  %1398 = vmatprep.subr.bf16.mxu1 %v1625_v1 }
  0x25   :  { %342 = vmatpush1.bf16.msra.mxu0 %v1533_v19  ;;  %1399 = vmatpush3.bf16.msra.mxu1 %v1564_v42  ;;  %v1599_v42 = vld [vmem:[%s1730_s25] sm:$0xff]  }
  0x26   :  { %504 = vmatprep.subr.bf16.mxu0 %v1536_v21  ;;  %1400 = vmatprep.subr.bf16.mxu1 %v1625_v1 }
  0x28   :  { %360 = vmatmul.mubr.bf16.vlgmr.msra.gmra.mrb[0].mxu0 %v1738_v22 }
  0x29   :  { %505 = vmatpush1.bf16.msra.mxu0 %v1534_v23  ;;  %536 = vmatprep.mubr.bf16.mxu0 %v1624_v0 }
  0x2a   :  { %506 = vmatprep.subr.bf16.mxu0 %v1539_v24  ;;  %1401 = vmatpush3.bf16.msra.mxu1 %v1565_v43  ;;  %v1574_v24 = vld [vmem:[%s1875_s4] ss:$8 sps:$4 sm:$0xff]  }
  0x2b   :  { %1406 = vmatprep.subr.bf16.mxu1 %v1625_v1  ;;  %v1600_v43 = vld [vmem:[%s1730_s25 + $0x48] sm:$0xff]  }
  0x2d   :  { %507 = vmatpush1.bf16.msra.mxu0 %v1537_v25  ;;  %1403 = vmatmul.mubr.bf16.vlgmr.msra.gmra.mrb[0].mxu1 %v1738_v22 }
  0x2e   :  { %508 = vmatprep.subr.bf16.mxu0 %v1542_v26  ;;  %1407 = vmatpush3.bf16.msra.mxu1 %v1777_v44 }
  0x2f   :  { %1422 = vmatprep.mubr.msk.bf16.mxu1 %vm1626_vm0, %v1625_v1  ;;  %1408 = vmatprep.subr.bf16.mxu1 %v1625_v1 }
  0x31   :  { %509 = vmatpush1.bf16.msra.mxu0 %v1540_v27  ;;  %v1579_v27 = vld [vmem:[%s1875_s4 + $0x14] ss:$8 sps:$4 sm:$0xff]  }
  0x32   :  { %510 = vmatprep.subr.bf16.mxu0 %v1545_v28  ;;  %1409 = vmatpush3.bf16.msra.mxu1 %v1785_v45 }
  0x33   :  { %1410 = vmatprep.subr.bf16.mxu1 %v1625_v1 }
  0x35   :  { %511 = vmatpush1.bf16.msra.mxu0 %v1543_v29  ;;  %v1577_v29 = vld [vmem:[%s1875_s4 + $0x10] ss:$8 sps:$4 sm:$0xff]  }
  0x36   :  { %512 = vmatprep.subr.bf16.mxu0 %v1548_v30  ;;  %1411 = vmatpush3.bf16.msra.mxu1 %v1798_v46  ;;  %v1582_v30 = vld [vmem:[%s1875_s4 + $0x24] ss:$8 sps:$4 sm:$0xff]  }
  0x37   :  { %1412 = vmatprep.subr.bf16.mxu1 %v1625_v1 }
  0x39   :  { %513 = vmatpush1.bf16.msra.mxu0 %v1546_v31  ;;  %v1580_v31 = vld [vmem:[%s1875_s4 + $0x20] ss:$8 sps:$4 sm:$0xff]  }
  0x3a   :  { %514 = vmatprep.subr.bf16.mxu0 %v1551_v32  ;;  %1413 = vmatpush3.bf16.msra.mxu1 %v1809_v47  ;;  %v1585_v32 = vld [vmem:[%s1875_s4 + $0x34] ss:$8 sps:$4 sm:$0xff]  }
  0x3b   :  { %1414 = vmatprep.subr.bf16.mxu1 %v1625_v1 }
  0x3d   :  { %515 = vmatpush1.bf16.msra.mxu0 %v1549_v33  ;;  %v1583_v33 = vld [vmem:[%s1875_s4 + $0x30] ss:$8 sps:$4 sm:$0xff]  }
  0x3e   :  { %516 = vmatprep.subr.bf16.mxu0 %v1554_v34  ;;  %1415 = vmatpush3.bf16.msra.mxu1 %v1818_v48  ;;  %v1588_v34 = vld [vmem:[%s1875_s4 + $0x44] ss:$8 sps:$4 sm:$0xff]  }
  0x3f   :  { %1416 = vmatprep.subr.bf16.mxu1 %v1625_v1 }
  0x41   :  { %517 = vmatpush1.bf16.msra.mxu0 %v1552_v35  ;;  %v1586_v35 = vld [vmem:[%s1875_s4 + $0x40] ss:$8 sps:$4 sm:$0xff]  }
  0x42   :  { %518 = vmatprep.subr.bf16.mxu0 %v1557_v36  ;;  %1417 = vmatpush3.bf16.msra.mxu1 %v1827_v49  ;;  %v1591_v36 = vld [vmem:[%s1875_s4 + $0x54] ss:$8 sps:$4 sm:$0xff]  }
  0x43   :  { %1418 = vmatprep.subr.bf16.mxu1 %v1625_v1 }
  0x45   :  { %519 = vmatpush1.bf16.msra.mxu0 %v1555_v37  ;;  %v1594_v37 = vld [vmem:[%s1875_s4 + $0x64] ss:$8 sps:$4 sm:$0xff]  }
  0x46   :  { %1426 = vmatprep.subr.bf16.mxu0 %v1625_v1  ;;  %1419 = vmatpush3.bf16.msra.mxu1 %v1836_v50 }
  0x47   :  { %1420 = vmatprep.subr.bf16.mxu1 %v1625_v1 }
  0x48   :  { %537 = vmatmul.mubr.bf16.vlgmr.msra.gmra.mrb[4].mxu0 %v150_v38  ;;  %v1592_v38 = vld [vmem:[%s1875_s4 + $0x60] ss:$8 sps:$4 sm:$0xff]  }
  0x49   :  { %1442 = vmatprep.mubr.msk.bf16.mxu0 %vm1626_vm0, %v1625_v1  ;;  %1427 = vmatpush3.bf16.msra.mxu0 %v1777_v44 }
  0x4a   :  { %1428 = vmatprep.subr.bf16.mxu0 %v1625_v1  ;;  %1421 = vmatpush3.bf16.msra.mxu1 %v1845_v51 }
  0x4b   :  { %1446 = vmatprep.subr.bf16.mxu1 %v1625_v1 }
  0x4d   :  { %1429 = vmatpush3.bf16.msra.mxu0 %v1785_v45 }
  0x4e   :  { %1430 = vmatprep.subr.bf16.mxu0 %v1625_v1 }
  0x51   :  { %1431 = vmatpush3.bf16.msra.mxu0 %v1798_v46 }
  0x52   :  { %1432 = vmatprep.subr.bf16.mxu0 %v1625_v1 }
  0x55   :  { %1433 = vmatpush3.bf16.msra.mxu0 %v1809_v47 }
  0x56   :  { %1434 = vmatprep.subr.bf16.mxu0 %v1625_v1 }
  0x59   :  { %1435 = vmatpush3.bf16.msra.mxu0 %v1818_v48 }
  0x5a   :  { %1436 = vmatprep.subr.bf16.mxu0 %v1625_v1 }
  0x5d   :  { %1437 = vmatpush3.bf16.msra.mxu0 %v1827_v49 }
  0x5e   :  { %1438 = vmatprep.subr.bf16.mxu0 %v1625_v1 }
  0x61   :  { %1439 = vmatpush3.bf16.msra.mxu0 %v1836_v50 }
  0x62   :  { %1440 = vmatprep.subr.bf16.mxu0 %v1625_v1 }
  0x65   :  { %1441 = vmatpush3.bf16.msra.mxu0 %v1845_v51 }
  0x66   :  { %840 = vmatprep.subr.bf16.mxu0 %v1576_v14 }
  0xfb   :  { %v361_v52 = vpop.f32.mrb[0].mxu0 }
  0xfc   :  { %v1850_v53 = vpop.f32.mrb[1].mxu0  ;;  %v547_v56 = vmin.f32 %v361_v52, 0.0  ;;  %v546_v3 = vadd.f32 1.0, %v361_v52  ;;  %vm545_vm1 = vcmp.gt.f32.partialorder %v361_v52, 0.0  ;;  %v1601_v52 = vld [vmem:[%s1730_s25 + $0x8] sm:$0xff]  }
  0xfd   :  { %v365_v54 = vpop.f32.mrb[2].mxu0 }
  0xfe   :  { %v366_v55 = vpop.f32.mrb[3].mxu0  ;;  %v548_v57 = vmul.f32 1.442695, %v547_v56  ;;  %v1602_v54 = vld [vmem:[%s1730_s25 + $0x50] sm:$0xff]   ;;  %v1604_v56 = vld [vmem:[%s1730_s25 + $0x58] sm:$0xff]  }
  0xff   :  { %v1603_v55 = vld [vmem:[%s1730_s25 + $0x10] sm:$0xff]  }
 0x100   :  { %1614 = vpow2.f32 %v548_v57  ;;  %v1869_v10 = vpop.f32.mrb[0].mxu1  ;;  %v1605_v57 = vld [vmem:[%s1730_s25 + $0x18] sm:$0xff]  }
 0x101   :  { %v1404_v11 = vpop.f32.mrb[1].mxu1 }
 0x102   :  { %v405_v12 = vpop.f32.mrb[2].mxu1 }
 0x103   :  { %v1405_v13 = vpop.f32.mrb[3].mxu1 }
 0x10a   :  { %v1615_v2 = vpop.eup %1614 }
 0x10b   :  { %v550_v6 = vsel %vm545_vm1, %v546_v3, %v1615_v2 }
 0x11b   :  { %v538_v58 = vpop.f32.mrb[4].mxu0 }
 0x11c   :  { %v553_v59 = vmin.f32 %v538_v58, 0.0  ;;  %v540_v60 = vpop.f32.mrb[5].mxu0  ;;  %v552_v4 = vadd.f32 1.0, %v538_v58  ;;  %vm551_vm2 = vcmp.gt.f32.partialorder %v538_v58, 0.0  ;;  %v1606_v58 = vld [vmem:[%s1730_s25 + $0x60] sm:$0xff]  }
 0x11d   :  { %v542_v61 = vpop.f32.mrb[6].mxu0 }
 0x11e   :  { %v554_v62 = vmul.f32 1.442695, %v553_v59  ;;  %v543_v63 = vpop.f32.mrb[7].mxu0  ;;  %v1607_v59 = vld [vmem:[%s1730_s25 + $0x20] sm:$0xff]  }
 0x120   :  { %1616 = vpow2.f32 %v554_v62 }
 0x12a   :  { %v1617_v5 = vpop.eup %1616 }
 0x12b   :  { %v556_v7 = vsel %vm551_vm2, %v552_v4, %v1617_v5 }
 0x12c   :  { %v557_v8 = vmul.f32 %v556_v7, %v550_v6 }
 0x12e   :  { %v558_v9 = vpack.c.bf16 %v557_v8, %v557_v8 }
 0x130   :  { %1423 = vmatmul.mubr.bf16.vlgmr.msra.gmra.mrb[4].mxu1 %v558_v9 }
 0x131   :  { %1447 = vmatpush3.bf16.msra.mxu1 %v1777_v44  ;;  %1462 = vmatprep.mubr.msk.bf16.mxu1 %vm1626_vm0, %v1625_v1 }
 0x132   :  { %1448 = vmatprep.subr.bf16.mxu1 %v1625_v1 }
 0x135   :  { %1449 = vmatpush3.bf16.msra.mxu1 %v1785_v45 }
 0x136   :  { %1450 = vmatprep.subr.bf16.mxu1 %v1625_v1 }
 0x139   :  { %1451 = vmatpush3.bf16.msra.mxu1 %v1798_v46 }
 0x13a   :  { %1452 = vmatprep.subr.bf16.mxu1 %v1625_v1 }
 0x13d   :  { %1453 = vmatpush3.bf16.msra.mxu1 %v1809_v47 }
 0x13e   :  { %1454 = vmatprep.subr.bf16.mxu1 %v1625_v1 }
 0x141   :  { %1455 = vmatpush3.bf16.msra.mxu1 %v1818_v48 }
 0x142   :  { %1456 = vmatprep.subr.bf16.mxu1 %v1625_v1 }
 0x145   :  { %1457 = vmatpush3.bf16.msra.mxu1 %v1827_v49 }
 0x146   :  { %1458 = vmatprep.subr.bf16.mxu1 %v1625_v1 }
 0x149   :  { %1459 = vmatpush3.bf16.msra.mxu1 %v1836_v50 }
 0x14a   :  { %1460 = vmatprep.subr.bf16.mxu1 %v1625_v1 }
 0x14d   :  { %1461 = vmatpush3.bf16.msra.mxu1 %v1845_v51 }
 0x14e   :  { %1346 = vmatprep.subr.bf16.mxu1 %v1598_v41 }
 0x203   :  { %v641_v15 = vpop.f32.mrb[4].mxu1 }
 0x204   :  { %v647_v16 = vadd.f32 1e-06, %v641_v15  ;;  %v1424_v17 = vpop.f32.mrb[5].mxu1 }
 0x205   :  { %v644_v18 = vpop.f32.mrb[6].mxu1 }
 0x206   :  { %1618 = vrcp.f32 %v647_v16  ;;  %v1425_v19 = vpop.f32.mrb[7].mxu1  ;;  %v1609_v18 = vld [vmem:[%s1730_s25 + $0x28] sm:$0xff]  }
 0x207   :  { %v1610_v19 = vld [vmem:[%s1730_s25 + $0x70] sm:$0xff]  }
 0x210   :  { %v1619_v20 = vpop.eup %1618 }
 0x211   :  { %v649_v21 = vmul.f32 %v1619_v20, %v641_v15  ;;  %v1611_v20 = vld [vmem:[%s1730_s25 + $0x30] sm:$0xff]  }
 0x213   :  { %v1878_v23 = vmul.f32 %v649_v21, %v540_v60  ;;  %v1608_v60 = vld [vmem:[%s1730_s25 + $0x68] sm:$0xff]   ;;  %v1612_v21 = vld [vmem:[%s1730_s25 + $0x78] sm:$0xff]  }
 0x215   :  { %v651_v25 = vpack.c.bf16 %v1878_v23, %v1878_v23  ;;  %v692_v26 = vmul.f32 %v1878_v23, %v1878_v23 }
 0x217   :  { %1443 = vmatmul.mubr.bf16.vlgmr.msra.gmra.mrb[8].mxu0 %v651_v25  ;;  %v693_v28 = vpack.c.bf16 %v692_v26, %v692_v26 }
 0x218   :  { %841 = vmatpush1.bf16.msra.mxu0 %v1574_v24  ;;  %872 = vmatprep.mubr.bf16.mxu0 %v1624_v0  ;;  %v1589_v0 = vld [vmem:[%s1875_s4 + $0x50] ss:$8 sps:$4 sm:$0xff]   ;;  %v885_v24 = vlaneseq }
 0x219   :  { %1463 = vmatmul.mubr.bf16.vlgmr.msra.gmra.mrb[8].mxu1 %v693_v28  ;;  %842 = vmatprep.subr.bf16.mxu0 %v1579_v27  ;;  %v883_v27 = vld [vmem:[%s140_s26] sm:$0x3] }
 0x21a   :  { %1347 = vmatpush3.bf16.msra.mxu1 %v1599_v42  ;;  %v886_v25 = vshrl.u32 %v885_v24, 7 }
 0x21b   :  { %1348 = vmatprep.subr.bf16.mxu1 %v1600_v43 }
 0x21c   :  { %843 = vmatpush1.bf16.msra.mxu0 %v1577_v29  ;;  %v887_v26 = vsub.s32 0, %v886_v25  ;;  %v891_v28 = vsub.s32 1, %v886_v25 }
 0x21d   :  { %844 = vmatprep.subr.bf16.mxu0 %v1582_v30 }
 0x21e   :  { %1349 = vmatpush3.bf16.msra.mxu1 %v1601_v52  ;;  %v888_v29 = vrot.slane %v883_v27, %v887_v26 }
 0x21f   :  { %1350 = vmatprep.subr.bf16.mxu1 %v1602_v54 }
 0x220   :  { %845 = vmatpush1.bf16.msra.mxu0 %v1580_v31  ;;  %v892_v31 = vrot.slane %v883_v27, %v891_v28 }
 0x221   :  { %846 = vmatprep.subr.bf16.mxu0 %v1585_v32 }
 0x222   :  { %1351 = vmatpush3.bf16.msra.mxu1 %v1603_v55 }
 0x223   :  { %1352 = vmatprep.subr.bf16.mxu1 %v1604_v56 }
 0x224   :  { %847 = vmatpush1.bf16.msra.mxu0 %v1583_v33 }
 0x225   :  { %848 = vmatprep.subr.bf16.mxu0 %v1588_v34 }
 0x226   :  { %1353 = vmatpush3.bf16.msra.mxu1 %v1605_v57 }
 0x227   :  { %1354 = vmatprep.subr.bf16.mxu1 %v1606_v58 }
 0x228   :  { %849 = vmatpush1.bf16.msra.mxu0 %v1586_v35 }
 0x229   :  { %850 = vmatprep.subr.bf16.mxu0 %v1591_v36 }
 0x22a   :  { %1355 = vmatpush3.bf16.msra.mxu1 %v1607_v59 }
 0x22b   :  { %1356 = vmatprep.subr.bf16.mxu1 %v1608_v60 }
 0x22c   :  { %851 = vmatpush1.bf16.msra.mxu0 %v1589_v0 }
 0x22d   :  { %852 = vmatprep.subr.bf16.mxu0 %v1594_v37 }
 0x22e   :  { %1357 = vmatpush3.bf16.msra.mxu1 %v1609_v18 }
 0x22f   :  { %1358 = vmatprep.subr.bf16.mxu1 %v1610_v19 }
 0x230   :  { %853 = vmatpush1.bf16.msra.mxu0 %v1592_v38 }
 0x231   :  { %854 = vmatprep.subr.bf16.mxu0 %v1597_v39 }
 0x232   :  { %1359 = vmatpush3.bf16.msra.mxu1 %v1611_v20 }
 0x233   :  { %1360 = vmatprep.subr.bf16.mxu1 %v1612_v21 }
 0x234   :  { %855 = vmatpush1.bf16.msra.mxu0 %v1595_v40 }
 0x235   :  { %1466 = vmatprep.subr.bf16.mxu0 %v1625_v1 }
 0x2ea   :  { %v686_v61 = vpop.f32.mrb[8].mxu0 }
 0x2eb   :  { %v734_v62 = vmul.f32 0.03125, %v686_v61  ;;  %v1444_v63 = vpop.f32.mrb[9].mxu0 }
 0x2ec   :  { %v689_v2 = vpop.f32.mrb[10].mxu0  ;;  %v728_v3 = vpop.f32.mrb[8].mxu1 }
 0x2ed   :  { %v736_v4 = vmul.f32 %v734_v62, %v734_v62  ;;  %v735_v5 = vmul.f32 0.03125, %v728_v3  ;;  %v1445_v6 = vpop.f32.mrb[11].mxu0  ;;  %v1464_v7 = vpop.f32.mrb[9].mxu1  ;;  %v739_v14 = vsub.f32 %v1878_v23, %v734_v62  ;;  %v1613_v23 = vld [vmem:[%s1730_s25 + $0x38] sm:$0xff]   ;;  %v1305_v2 = vld [vmem:[%s146_s27] ss:$0 sm:$0xff] }
 0x2ee   :  { %v731_v8 = vpop.f32.mrb[10].mxu1  ;;  %1361 = vmatpush3.bf16.msra.mxu1 %v1613_v23 }
 0x2ef   :  { %v737_v9 = vsub.f32 %v735_v5, %v736_v4  ;;  %v1465_v11 = vpop.f32.mrb[11].mxu1  ;;  %1486 = vmatprep.subr.bf16.mxu1 %v1625_v1  ;;  %v1306_v4 = vld [vmem:[%s146_s27 + $0x1] ss:$0 sm:$0xff]  ;;  %v1173_v5 = vunpack.c.l.bf16 %v1738_v22 }
 0x2f1   :  { %v738_v12 = vmax.f32 %v737_v9, 0.0 }
 0x2f3   :  { %v740_v13 = vadd.f32 1e-05, %v738_v12 }
 0x2f5   :  { %1620 = vrsqrt.f32 %v740_v13 }
 0x2ff   :  { %v1621_v15 = vpop.eup %1620 }
 0x300   :  { %v742_v16 = vmul.f32 %v1621_v15, %v739_v14 }
 0x302   :  { %v743_v17 = vpack.c.bf16 %v742_v16, %v742_v16 }
 0x304   :  { %873 = vmatmul.mubr.bf16.vlgmr.msra.gmra.mrb[12].mxu0 %v743_v17 }
 0x305   :  { %1467 = vmatpush3.bf16.msra.mxu0 %v1777_v44  ;;  %1482 = vmatprep.mubr.msk.bf16.mxu0 %vm1626_vm0, %v1625_v1 }
 0x306   :  { %1468 = vmatprep.subr.bf16.mxu0 %v1625_v1 }
 0x309   :  { %1469 = vmatpush3.bf16.msra.mxu0 %v1785_v45 }
 0x30a   :  { %1470 = vmatprep.subr.bf16.mxu0 %v1625_v1 }
 0x30d   :  { %1471 = vmatpush3.bf16.msra.mxu0 %v1798_v46 }
 0x30e   :  { %1472 = vmatprep.subr.bf16.mxu0 %v1625_v1 }
 0x311   :  { %1473 = vmatpush3.bf16.msra.mxu0 %v1809_v47 }
 0x312   :  { %1474 = vmatprep.subr.bf16.mxu0 %v1625_v1 }
 0x315   :  { %1475 = vmatpush3.bf16.msra.mxu0 %v1818_v48 }
 0x316   :  { %1476 = vmatprep.subr.bf16.mxu0 %v1625_v1 }
 0x319   :  { %1477 = vmatpush3.bf16.msra.mxu0 %v1827_v49 }
 0x31a   :  { %1478 = vmatprep.subr.bf16.mxu0 %v1625_v1 }
 0x31d   :  { %1479 = vmatpush3.bf16.msra.mxu0 %v1836_v50 }
 0x31e   :  { %1480 = vmatprep.subr.bf16.mxu0 %v1625_v1 }
 0x321   :  { %1481 = vmatpush3.bf16.msra.mxu0 %v1845_v51 }
 0x3d7   :  { %v874_v30 = vpop.f32.mrb[12].mxu0 }
 0x3d8   :  { %v881_v32 = vadd.f32 %v874_v30, %v1850_v53  ;;  %v876_v33 = vpop.f32.mrb[13].mxu0 }
 0x3d9   :  { %v882_v34 = vadd.f32 %v876_v33, %v1869_v10  ;;  %v878_v35 = vpop.f32.mrb[14].mxu0 }
 0x3da   :  { %v895_v0 = vadd.f32 %v888_v29, %v881_v32  ;;  %v879_v36 = vpop.f32.mrb[15].mxu0 }
 0x3db   :  { %v896_v37 = vadd.f32 %v892_v31, %v882_v34 }
 0x3dc   :  { %v897_v38 = vmax.f32 %v895_v0, 0.0 }
 0x3dd   :  { %v898_v39 = vmax.f32 %v896_v37, 0.0 }
 0x3de   :  { %v899_v41 = vpack.c.bf16 %v897_v38, %v897_v38 }
 0x3df   :  { %v900_v40 = vpack.c.bf16 %v898_v39, %v898_v39 }
 0x3e1   :  { %1061 = vmatprep.mubr.bf16.mxu1 %v900_v40 }
 0x3e2   :  { %1062 = vmatmul.mubr.bf16.vlgmr.msra.gmra.mrb[12].mxu1 %v899_v41 }
 0x3e3   :  { %1487 = vmatpush3.bf16.msra.mxu1 %v1777_v44  ;;  %1502 = vmatprep.mubr.msk.bf16.mxu1 %vm1626_vm0, %v1625_v1 }
 0x3e4   :  { %1488 = vmatprep.subr.bf16.mxu1 %v1625_v1 }
 0x3e7   :  { %1489 = vmatpush3.bf16.msra.mxu1 %v1785_v45 }
 0x3e8   :  { %1490 = vmatprep.subr.bf16.mxu1 %v1625_v1 }
 0x3eb   :  { %1491 = vmatpush3.bf16.msra.mxu1 %v1798_v46 }
 0x3ec   :  { %1492 = vmatprep.subr.bf16.mxu1 %v1625_v1 }
 0x3ef   :  { %1493 = vmatpush3.bf16.msra.mxu1 %v1809_v47 }
 0x3f0   :  { %1494 = vmatprep.subr.bf16.mxu1 %v1625_v1 }
 0x3f3   :  { %1495 = vmatpush3.bf16.msra.mxu1 %v1818_v48 }
 0x3f4   :  { %1496 = vmatprep.subr.bf16.mxu1 %v1625_v1 }
 0x3f7   :  { %1497 = vmatpush3.bf16.msra.mxu1 %v1827_v49 }
 0x3f8   :  { %1498 = vmatprep.subr.bf16.mxu1 %v1625_v1 }
 0x3fb   :  { %1499 = vmatpush3.bf16.msra.mxu1 %v1836_v50 }
 0x3fc   :  { %1500 = vmatprep.subr.bf16.mxu1 %v1625_v1 }
 0x3ff   :  { %1501 = vmatpush3.bf16.msra.mxu1 %v1845_v51 }
 0x4b5   :  { %v1362_v44 = vpop.f32.mrb[12].mxu1 }
 0x4b6   :  { %v1363_v45 = vpop.f32.mrb[13].mxu1 }
 0x4b7   :  { %v1364_v46 = vadd.f32 %v1363_v45, %v1362_v44  ;;  %v1365_v47 = vpop.f32.mrb[14].mxu1 }
 0x4b8   :  { %v1366_v53 = vpop.f32.mrb[15].mxu1 }
 0x4b9   :  { %v1069_v10 = vpack.c.bf16 %v1364_v46, %v1364_v46  ;;  %v1110_v42 = vmul.f32 %v1364_v46, %v1364_v46 }
 0x4bb   :  { %v1111_v48 = vpack.c.bf16 %v1110_v42, %v1110_v42  ;;  %1483 = vmatmul.mubr.bf16.vlgmr.msra.gmra.mrb[16].mxu0 %v1069_v10 }
 0x4bd   :  { %1503 = vmatmul.mubr.bf16.vlgmr.msra.gmra.mrb[16].mxu1 %v1111_v48 }
 0x58e   :  { %v1104_v49 = vpop.f32.mrb[16].mxu0 }
 0x58f   :  { %v1152_v43 = vmul.f32 0.03125, %v1104_v49  ;;  %v1484_v52 = vpop.f32.mrb[17].mxu0 }
 0x590   :  { %v1107_v54 = vpop.f32.mrb[18].mxu0  ;;  %v1146_v50 = vpop.f32.mrb[16].mxu1 }
 0x591   :  { %v1154_v55 = vmul.f32 %v1152_v43, %v1152_v43  ;;  %v1153_v1 = vmul.f32 0.03125, %v1146_v50  ;;  %v1485_v56 = vpop.f32.mrb[19].mxu0  ;;  %v1504_v51 = vpop.f32.mrb[17].mxu1  ;;  %v1157_v62 = vsub.f32 %v1364_v46, %v1152_v43 }
 0x592   :  { %v1149_v57 = vpop.f32.mrb[18].mxu1 }
 0x593   :  { %v1155_v58 = vsub.f32 %v1153_v1, %v1154_v55  ;;  %v1505_v59 = vpop.f32.mrb[19].mxu1 }
 0x595   :  { %v1156_v60 = vmax.f32 %v1155_v58, 0.0 }
 0x597   :  { %v1158_v61 = vadd.f32 1e-05, %v1156_v60 }
 0x599   :  { %1622 = vrsqrt.f32 %v1158_v61 }
 0x5a3   :  { %v1623_v63 = vpop.eup %1622 }
 0x5a4   :  { %v1160_v3 = vmul.f32 %v1623_v63, %v1157_v62 }
 0x5a6   :  { %v1166_v6 = vmul.f32 %v1305_v2, %v1160_v3 }
 0x5a8   :  { %v1172_v7 = vadd.f32 %v1306_v4, %v1166_v6 }
 0x5aa   :  { %v1174_v8 = vadd.f32 %v1173_v5, %v1172_v7 }
 0x5ac   :  { %1175 = vst [vmem:[%s1980_s10] sm:$0xff] %v1174_v8 }

// kernel: cross_transformer_forward.3
= control target key start
LH: loop header
LB: loop body
LE: loop exit
PB: predicated region body
PF: predicated region fallthrough
CT: control target
= control target key end

     0   :  { %s2481_s0 = inlined_call_operand.vmem [shape: s32[2], index: 0, kind: input, shape index: {}]   ;;  %s2482_s1 = inlined_call_operand.vmem [shape: bf16[16,128], index: 1, kind: input, shape index: {}]   ;;  %s2483_s2 = inlined_call_operand.vmem [shape: bf16[16,128], index: 2, kind: input, shape index: {}]   ;;  %s2484_s3 = inlined_call_operand.vmem [shape: bf16[128,128], index: 3, kind: input, shape index: {}]   ;;  %s2485_s4 = inlined_call_operand.vmem [shape: bf16[2,128,384], index: 4, kind: input, shape index: {}]   ;;  %s2486_s5 = inlined_call_operand.vmem [shape: bf16[2,128,256], index: 5, kind: input, shape index: {}]   ;;  %s2487_s6 = inlined_call_operand.vmem [shape: bf16[2,128,256], index: 6, kind: input, shape index: {}]   ;;  %s2488_s7 = inlined_call_operand.vmem [shape: bf16[2,256,128], index: 7, kind: input, shape index: {}]   ;;  %s2489_s8 = inlined_call_operand.vmem [shape: f32[2,1,256], index: 8, kind: input, shape index: {}]   ;;  %s2490_s9 = inlined_call_operand.vmem [shape: f32[2,2,128], index: 9, kind: input, shape index: {}]   ;;  %s2491_s10 = inlined_call_operand.vmem [shape: f32[16,128], index: 10, kind: output, shape index: {}]  }
   0x1   :  { %s15_s15 = sshll.u32 %s2481_s0, 4  ;;  %s16_s15 = int_to_ptr.vmem [resolvable:$true] %s15_s15 }
   0x2   :  { %s2100_s16 = scalar_lea.vmem %s16_s15, 16  ;;  %p2105_p1 = scmp.lt.s32.totalorder %s16_s15, %s16_s15 }
   0x3   :  { %p2101_p0 = scmp.ne.s32.totalorder %s16_s15, %s2100_s16  ;;  %p2106_p2 = scmp.lt.s32.totalorder %s2100_s16, %s2100_s16 }
   0x5   :  { %p2107_p3 = por %p2106_p2, %p2105_p1 }
   0x7   :  { %p2108_p4 = pnand %p2107_p3, %p2101_p0 }
   0x9   :  { %2111 = shalt.err (!%p2108_p4)  }
   0xa   :  { %s2122_s17 = smov [#allocation3]  }
   0xb   :  { %18 = dma.vmem_to_smem %s16_s15, 16, %s2122_s17, [#allocation2] }
   0xc   :  { %2116 = dma.done.wait [#allocation2], 16 }
   0xd   :  { %2117 = vsyncadd [#allocation2], 4294967280 }
   0xe   :  { %20 = sfence }
   0xf   :  { %s2184_s18 = smov 0  }
  0x10 LB: > { %s2190_s0 = sadd.s32 4294967295, %s2120_s18   ;;  %p1677_p5 = scmp.ge.s32.totalorder %s2120_s18, 1  ;;  %s2120_s18 = sphi %s2184_s18, %s26_s18  }
  0x11   : > { %p384_p6 = scmp.lt.s32.totalorder %s2120_s18, 3 }
  0x13   : > { %p385_p7 = pnand %p1677_p5, %p384_p6 }
  0x14   : > { %s464_s19 = sld [smem:[#allocation3 + %s2190_s0]] (!%p385_p7)  ;;  %v2123_v0 = vmov (!%p385_p7), 0   ;;  %v2124_v1 = vmov (!%p385_p7), 0.0   ;;  %p456_p10 = scmp.lt.s32.totalorder (!%p385_p7), %s2190_s0, 1  ;;  %v2278_v44 = vld [vmem:[%s2484_s3] sm:$0xff] (!%p385_p7)   ;;  %vm2125_vm0 = vmmov (!%p385_p7), 0  }
  0x15   : > { %388 = sbr.rel (%p385_p7) target bundleno = 1478 (0x5c6), region = 56  ;;  %719 = vmatprep.mubr.bf16.mxu0 (!%p385_p7), %v2123_v0  ;;  %1853 = vmatprep.subr.bf16.mxu1 (!%p385_p7), %v2124_v1  ;;  %s471_s20 = sld [smem:[#allocation3 + %s2190_s0]] (!%p385_p7)  ;;  %v2292_v45 = vld [vmem:[%s2484_s3 + $0x8] sm:$0xff] (!%p385_p7)   ;;  %v2303_v46 = vld [vmem:[%s2484_s3 + $0x10] sm:$0xff] (!%p385_p7)   ;;  %v2313_v47 = vld [vmem:[%s2484_s3 + $0x18] sm:$0xff] (!%p385_p7)  }
  0x16   : > { %1869 = vmatprep.mubr.msk.bf16.mxu1 (!%p385_p7), %vm2125_vm0, %v2124_v1  ;;  %v2322_v48 = vld [vmem:[%s2484_s3 + $0x20] sm:$0xff] (!%p385_p7)   ;;  %v2331_v49 = vld [vmem:[%s2484_s3 + $0x28] sm:$0xff] (!%p385_p7)   ;;  %v2340_v50 = vld [vmem:[%s2484_s3 + $0x30] sm:$0xff] (!%p385_p7)   ;;  %s478_s15 = sld [smem:[#allocation3 + %s2190_s0]] (!%p385_p7) }
  0x17   : > { %v2349_v51 = vld [vmem:[%s2484_s3 + $0x38] sm:$0xff] (!%p385_p7)   ;;  %s492_s26 = sld [smem:[#allocation3 + %s2190_s0]] (!%p385_p7) }
  0x18   : > { %s498_s12 = sld [smem:[#allocation3 + %s2190_s0]] (!%p385_p7) }
  0x1a   : > { %p465_p8 = scmp.lt.s32.totalorder (!%p385_p7), %s464_s19, 1 }
  0x1b   : > { %p472_p9 = scmp.lt.s32.totalorder (!%p385_p7), %s471_s20, 1 }
  0x1c   : > { %s2493_s19 = smov (!%p465_p8, %s464_s19), 1  ;;  %p479_p11 = scmp.lt.s32.totalorder %s478_s15, 1 }
  0x1d   : > { %s1973_s21 = smul.u32 192, %s2493_s19  ;;  %s2495_s20 = smov (!%p472_p9, %s471_s20), 1 }
  0x1e   : > { %s1774_s25 = sshll.u32 %s2495_s20, 7  ;;  %s2497_s15 = smov (!%p479_p11, %s478_s15), 1 }
  0x1f   : > { %s2201_s24 = scalar_lea.vmem %s2485_s4, %s1973_s21  ;;  %s2213_s28 = scalar_lea.vmem %s2486_s5, %s1774_s25 }
  0x20   : > { %v1986_v2 = vld [vmem:[%s2201_s24 + $0x4] ss:$12 sps:$4 sm:$0xff]   ;;  %v1988_v3 = vld [vmem:[%s2201_s24] ss:$12 sps:$4 sm:$0xff]   ;;  %v1989_v4 = vld [vmem:[%s2201_s24 + $0x1c] ss:$12 sps:$4 sm:$0xff]  }
  0x21   : > { %687 = vmatprep.subr.bf16.mxu0 %v1986_v2  ;;  %v1991_v5 = vld [vmem:[%s2201_s24 + $0x18] ss:$12 sps:$4 sm:$0xff]   ;;  %v1992_v6 = vld [vmem:[%s2201_s24 + $0x34] ss:$12 sps:$4 sm:$0xff]   ;;  %v1994_v7 = vld [vmem:[%s2201_s24 + $0x30] ss:$12 sps:$4 sm:$0xff]  }
  0x22   : > { %688 = vmatpush1.bf16.msra.mxu0 %v1988_v3  ;;  %v1995_v8 = vld [vmem:[%s2201_s24 + $0x4c] ss:$12 sps:$4 sm:$0xff]   ;;  %v1997_v9 = vld [vmem:[%s2201_s24 + $0x48] ss:$12 sps:$4 sm:$0xff]   ;;  %v1998_v10 = vld [vmem:[%s2201_s24 + $0x64] ss:$12 sps:$4 sm:$0xff]  }
  0x23   : > { %689 = vmatprep.subr.bf16.mxu0 %v1989_v4  ;;  %v2000_v11 = vld [vmem:[%s2201_s24 + $0x60] ss:$12 sps:$4 sm:$0xff]   ;;  %v2001_v12 = vld [vmem:[%s2201_s24 + $0x7c] ss:$12 sps:$4 sm:$0xff]   ;;  %s2221_s29 = scalar_select %p456_p10, %s2190_s0, 1 }
  0x24   : > { %v2003_v13 = vld [vmem:[%s2201_s24 + $0x78] ss:$12 sps:$4 sm:$0xff]   ;;  %v2004_v14 = vld [vmem:[%s2201_s24 + $0x94] ss:$12 sps:$4 sm:$0xff]   ;;  %v2006_v15 = vld [vmem:[%s2201_s24 + $0x90] ss:$12 sps:$4 sm:$0xff]  }
  0x25   : > { %s1678_s30 = sshll.u32 %s2221_s29, 2  ;;  %v2034_v16 = vld [vmem:[%s2201_s24 + $0x8] ss:$12 sps:$4 sm:$0xff]   ;;  %v2007_v17 = vld [vmem:[%s2201_s24 + $0xac] ss:$12 sps:$4 sm:$0xff]   ;;  %s485_s21 = sld [smem:[#allocation3 + %s2190_s0]] }
  0x26   : > { %690 = vmatpush1.bf16.msra.mxu0 %v1991_v5  ;;  %1854 = vmatpush3.bf16.msra.mxu1 %v2034_v16  ;;  %v2035_v18 = vld [vmem:[%s2201_s24 + $0x20] ss:$12 sps:$4 sm:$0xff]   ;;  %v2009_v19 = vld [vmem:[%s2201_s24 + $0xa8] ss:$12 sps:$4 sm:$0xff]   ;;  %s459_s13 = scalar_lea.vmem %s2482_s1, %s1678_s30  ;;  %v2036_v21 = vld [vmem:[%s2201_s24 + $0x38] ss:$12 sps:$4 sm:$0xff]   ;;  %s463_s16 = scalar_lea.vmem %s2483_s2, %s1678_s30 }
  0x27   : > { %691 = vmatprep.subr.bf16.mxu0 %v1992_v6  ;;  %1855 = vmatprep.subr.bf16.mxu1 %v2124_v1  ;;  %v2012_v20 = vld [vmem:[%s2213_s28 + $0x4] ss:$8 sps:$4 sm:$0xff]   ;;  %v2240_v22 = vld [vmem:[%s459_s13] sm:$0xf]  ;;  %v2015_v24 = vld [vmem:[%s2213_s28 + $0x14] ss:$8 sps:$4 sm:$0xff]  }
  0x28   : > { %v2010_v23 = vld [vmem:[%s2213_s28] ss:$8 sps:$4 sm:$0xff]   ;;  %v2013_v25 = vld [vmem:[%s2213_s28 + $0x10] ss:$8 sps:$4 sm:$0xff]   ;;  %v2018_v26 = vld [vmem:[%s2213_s28 + $0x24] ss:$8 sps:$4 sm:$0xff]  }
  0x29   : > { %v2016_v27 = vld [vmem:[%s2213_s28 + $0x20] ss:$8 sps:$4 sm:$0xff]   ;;  %v2021_v28 = vld [vmem:[%s2213_s28 + $0x34] ss:$8 sps:$4 sm:$0xff]   ;;  %v2019_v29 = vld [vmem:[%s2213_s28 + $0x30] ss:$8 sps:$4 sm:$0xff]  }
  0x2a   : > { %692 = vmatpush1.bf16.msra.mxu0 %v1994_v7  ;;  %1856 = vmatpush3.bf16.msra.mxu1 %v2035_v18  ;;  %v2024_v30 = vld [vmem:[%s2213_s28 + $0x44] ss:$8 sps:$4 sm:$0xff]   ;;  %v2022_v31 = vld [vmem:[%s2213_s28 + $0x40] ss:$8 sps:$4 sm:$0xff]   ;;  %v2027_v32 = vld [vmem:[%s2213_s28 + $0x54] ss:$8 sps:$4 sm:$0xff]  }
  0x2b   : > { %693 = vmatprep.subr.bf16.mxu0 %v1995_v8  ;;  %1857 = vmatprep.subr.bf16.mxu1 %v2124_v1  ;;  %v2025_v33 = vld [vmem:[%s2213_s28 + $0x50] ss:$8 sps:$4 sm:$0xff]   ;;  %v2030_v34 = vld [vmem:[%s2213_s28 + $0x64] ss:$8 sps:$4 sm:$0xff]   ;;  %v2028_v35 = vld [vmem:[%s2213_s28 + $0x60] ss:$8 sps:$4 sm:$0xff]  }
  0x2c   : > { %v2033_v36 = vld [vmem:[%s2213_s28 + $0x74] ss:$8 sps:$4 sm:$0xff]   ;;  %v2031_v37 = vld [vmem:[%s2213_s28 + $0x70] ss:$8 sps:$4 sm:$0xff]   ;;  %v510_v38 = vld [vmem:[%s463_s16] sm:$0xf] }
  0x2d   : > { %v2037_v39 = vld [vmem:[%s2201_s24 + $0x50] ss:$12 sps:$4 sm:$0xff]   ;;  %v2038_v40 = vld [vmem:[%s2201_s24 + $0x68] ss:$12 sps:$4 sm:$0xff]   ;;  %v2039_v41 = vld [vmem:[%s2201_s24 + $0x80] ss:$12 sps:$4 sm:$0xff]  }
  0x2e   : > { %694 = vmatpush1.bf16.msra.mxu0 %v1997_v9  ;;  %1858 = vmatpush3.bf16.msra.mxu1 %v2036_v21  ;;  %v2040_v42 = vld [vmem:[%s2201_s24 + $0x98] ss:$12 sps:$4 sm:$0xff]   ;;  %v2041_v43 = vld [vmem:[%s2201_s24 + $0xb0] ss:$12 sps:$4 sm:$0xff]   ;;  %s1775_s16 = sshll.u32 %s2497_s15, 7  ;;  %p486_p12 = scmp.lt.s32.totalorder %s485_s21, 1 }
  0x2f   : > { %695 = vmatprep.subr.bf16.mxu0 %v1998_v10  ;;  %1859 = vmatprep.subr.bf16.mxu1 %v2124_v1  ;;  %s2379_s20 = scalar_lea.vmem %s2487_s6, %s1775_s16  ;;  %p493_p13 = scmp.lt.s32.totalorder %s492_s26, 1 }
  0x30   : > { %s2499_s21 = smov (!%p486_p12, %s485_s21), 1  ;;  %p499_p0 = scmp.lt.s32.totalorder %s498_s12, 1 }
  0x31   : > { %s1776_s22 = sshll.u32 %s2499_s21, 7  ;;  %s2501_s26 = smov (!%p493_p13, %s492_s26), 1 }
  0x32   : > { %696 = vmatpush1.bf16.msra.mxu0 %v2000_v11  ;;  %1860 = vmatpush3.bf16.msra.mxu1 %v2037_v39  ;;  %v2073_v39 = vld [vmem:[%s2379_s20 + $0x74] ss:$8 sps:$4 sm:$0xff]   ;;  %s2409_s25 = scalar_lea.vmem %s2488_s7, %s1776_s22  ;;  %s1687_s27 = sshll.u32 %s2501_s26, 1 }
  0x33   : > { %697 = vmatprep.subr.bf16.mxu0 %v2001_v12  ;;  %1861 = vmatprep.subr.bf16.mxu1 %v2124_v1  ;;  %s496_s11 = scalar_lea.vmem %s2489_s8, %s1687_s27  ;;  %s2503_s12 = smov (!%p499_p0, %s498_s12), 1 }
  0x34   : > { %s1688_s13 = sshll.u32 %s2503_s12, 1  ;;  %s1689_s16 = sshll.u32 %s2221_s29, 3 }
  0x35   : > { %s502_s15 = scalar_lea.vmem %s2490_s9, %s1688_s13 }
  0x36   : > { %698 = vmatpush1.bf16.msra.mxu0 %v2003_v13  ;;  %1862 = vmatpush3.bf16.msra.mxu1 %v2038_v40  ;;  %v2071_v40 = vld [vmem:[%s2379_s20 + $0x70] ss:$8 sps:$4 sm:$0xff]  }
  0x37   : > { %699 = vmatprep.subr.bf16.mxu0 %v2004_v14  ;;  %1863 = vmatprep.subr.bf16.mxu1 %v2124_v1  ;;  %v2052_v14 = vld [vmem:[%s2379_s20 + $0x4] ss:$8 sps:$4 sm:$0xff]  }
  0x3a   : > { %700 = vmatpush1.bf16.msra.mxu0 %v2006_v15  ;;  %1864 = vmatpush3.bf16.msra.mxu1 %v2039_v41  ;;  %v2074_v41 = vld [vmem:[%s2409_s25 + $0x40] sm:$0xff]  }
  0x3b   : > { %701 = vmatprep.subr.bf16.mxu0 %v2007_v17  ;;  %1865 = vmatprep.subr.bf16.mxu1 %v2124_v1 }
  0x3e   : > { %702 = vmatpush1.bf16.msra.mxu0 %v2009_v19  ;;  %1866 = vmatpush3.bf16.msra.mxu1 %v2040_v42  ;;  %v2075_v42 = vld [vmem:[%s2409_s25] sm:$0xff]  }
  0x3f   : > { %864 = vmatprep.subr.bf16.mxu0 %v2012_v20  ;;  %1867 = vmatprep.subr.bf16.mxu1 %v2124_v1 }
  0x41   : > { %720 = vmatmul.mubr.bf16.vlgmr.msra.gmra.mrb[0].mxu0 %v2240_v22 }
  0x42   : > { %865 = vmatpush1.bf16.msra.mxu0 %v2010_v23  ;;  %896 = vmatprep.mubr.bf16.mxu0 %v2123_v0 }
  0x43   : > { %866 = vmatprep.subr.bf16.mxu0 %v2015_v24  ;;  %1868 = vmatpush3.bf16.msra.mxu1 %v2041_v43  ;;  %v2050_v24 = vld [vmem:[%s2379_s20] ss:$8 sps:$4 sm:$0xff]  }
  0x44   : > { %1873 = vmatprep.subr.bf16.mxu1 %v2124_v1  ;;  %v2076_v43 = vld [vmem:[%s2409_s25 + $0x48] sm:$0xff]  }
  0x46   : > { %867 = vmatpush1.bf16.msra.mxu0 %v2013_v25  ;;  %1870 = vmatmul.mubr.bf16.vlgmr.msra.gmra.mrb[0].mxu1 %v2240_v22 }
  0x47   : > { %868 = vmatprep.subr.bf16.mxu0 %v2018_v26  ;;  %1874 = vmatpush3.bf16.msra.mxu1 %v2278_v44 }
  0x48   : > { %1889 = vmatprep.mubr.msk.bf16.mxu1 %vm2125_vm0, %v2124_v1  ;;  %1875 = vmatprep.subr.bf16.mxu1 %v2124_v1 }
  0x4a   : > { %869 = vmatpush1.bf16.msra.mxu0 %v2016_v27  ;;  %v2055_v27 = vld [vmem:[%s2379_s20 + $0x14] ss:$8 sps:$4 sm:$0xff]  }
  0x4b   : > { %870 = vmatprep.subr.bf16.mxu0 %v2021_v28  ;;  %1876 = vmatpush3.bf16.msra.mxu1 %v2292_v45 }
  0x4c   : > { %1877 = vmatprep.subr.bf16.mxu1 %v2124_v1 }
  0x4e   : > { %871 = vmatpush1.bf16.msra.mxu0 %v2019_v29  ;;  %v2053_v29 = vld [vmem:[%s2379_s20 + $0x10] ss:$8 sps:$4 sm:$0xff]  }
  0x4f   : > { %872 = vmatprep.subr.bf16.mxu0 %v2024_v30  ;;  %1878 = vmatpush3.bf16.msra.mxu1 %v2303_v46  ;;  %v2058_v30 = vld [vmem:[%s2379_s20 + $0x24] ss:$8 sps:$4 sm:$0xff]  }
  0x50   : > { %1879 = vmatprep.subr.bf16.mxu1 %v2124_v1 }
  0x52   : > { %873 = vmatpush1.bf16.msra.mxu0 %v2022_v31  ;;  %v2056_v31 = vld [vmem:[%s2379_s20 + $0x20] ss:$8 sps:$4 sm:$0xff]  }
  0x53   : > { %874 = vmatprep.subr.bf16.mxu0 %v2027_v32  ;;  %1880 = vmatpush3.bf16.msra.mxu1 %v2313_v47  ;;  %v2061_v32 = vld [vmem:[%s2379_s20 + $0x34] ss:$8 sps:$4 sm:$0xff]  }
  0x54   : > { %1881 = vmatprep.subr.bf16.mxu1 %v2124_v1 }
  0x56   : > { %875 = vmatpush1.bf16.msra.mxu0 %v2025_v33  ;;  %v2059_v33 = vld [vmem:[%s2379_s20 + $0x30] ss:$8 sps:$4 sm:$0xff]  }
  0x57   : > { %876 = vmatprep.subr.bf16.mxu0 %v2030_v34  ;;  %1882 = vmatpush3.bf16.msra.mxu1 %v2322_v48  ;;  %v2064_v34 = vld [vmem:[%s2379_s20 + $0x44] ss:$8 sps:$4 sm:$0xff]  }
  0x58   : > { %1883 = vmatprep.subr.bf16.mxu1 %v2124_v1 }
  0x5a   : > { %877 = vmatpush1.bf16.msra.mxu0 %v2028_v35  ;;  %v2062_v35 = vld [vmem:[%s2379_s20 + $0x40] ss:$8 sps:$4 sm:$0xff]  }
  0x5b   : > { %878 = vmatprep.subr.bf16.mxu0 %v2033_v36  ;;  %1884 = vmatpush3.bf16.msra.mxu1 %v2331_v49  ;;  %v2067_v36 = vld [vmem:[%s2379_s20 + $0x54] ss:$8 sps:$4 sm:$0xff]  }
  0x5c   : > { %1885 = vmatprep.subr.bf16.mxu1 %v2124_v1 }
  0x5e   : > { %879 = vmatpush1.bf16.msra.mxu0 %v2031_v37  ;;  %v2070_v37 = vld [vmem:[%s2379_s20 + $0x64] ss:$8 sps:$4 sm:$0xff]  }
  0x5f   : > { %1893 = vmatprep.subr.bf16.mxu0 %v2124_v1  ;;  %1886 = vmatpush3.bf16.msra.mxu1 %v2340_v50 }
  0x60   : > { %1887 = vmatprep.subr.bf16.mxu1 %v2124_v1 }
  0x61   : > { %897 = vmatmul.mubr.bf16.vlgmr.msra.gmra.mrb[4].mxu0 %v510_v38  ;;  %v2068_v38 = vld [vmem:[%s2379_s20 + $0x60] ss:$8 sps:$4 sm:$0xff]  }
  0x62   : > { %1894 = vmatpush3.bf16.msra.mxu0 %v2278_v44  ;;  %1909 = vmatprep.mubr.msk.bf16.mxu0 %vm2125_vm0, %v2124_v1 }
  0x63   : > { %1895 = vmatprep.subr.bf16.mxu0 %v2124_v1  ;;  %1888 = vmatpush3.bf16.msra.mxu1 %v2349_v51 }
  0x64   : > { %1913 = vmatprep.subr.bf16.mxu1 %v2124_v1 }
  0x66   : > { %1896 = vmatpush3.bf16.msra.mxu0 %v2292_v45 }
  0x67   : > { %1897 = vmatprep.subr.bf16.mxu0 %v2124_v1 }
  0x6a   : > { %1898 = vmatpush3.bf16.msra.mxu0 %v2303_v46 }
  0x6b   : > { %1899 = vmatprep.subr.bf16.mxu0 %v2124_v1 }
  0x6e   : > { %1900 = vmatpush3.bf16.msra.mxu0 %v2313_v47 }
  0x6f   : > { %1901 = vmatprep.subr.bf16.mxu0 %v2124_v1 }
  0x72   : > { %1902 = vmatpush3.bf16.msra.mxu0 %v2322_v48 }
  0x73   : > { %1903 = vmatprep.subr.bf16.mxu0 %v2124_v1 }
  0x76   : > { %1904 = vmatpush3.bf16.msra.mxu0 %v2331_v49 }
  0x77   : > { %1905 = vmatprep.subr.bf16.mxu0 %v2124_v1 }
  0x7a   : > { %1906 = vmatpush3.bf16.msra.mxu0 %v2340_v50 }
  0x7b   : > { %1907 = vmatprep.subr.bf16.mxu0 %v2124_v1 }
  0x7e   : > { %1908 = vmatpush3.bf16.msra.mxu0 %v2349_v51 }
  0x7f   : > { %1200 = vmatprep.subr.bf16.mxu0 %v2052_v14 }
 0x114   : > { %v721_v52 = vpop.f32.mrb[0].mxu0 }
 0x115   : > { %v2354_v53 = vpop.f32.mrb[1].mxu0  ;;  %v907_v56 = vmin.f32 %v721_v52, 0.0  ;;  %v906_v3 = vadd.f32 1.0, %v721_v52  ;;  %vm905_vm1 = vcmp.gt.f32.partialorder %v721_v52, 0.0  ;;  %v2077_v52 = vld [vmem:[%s2409_s25 + $0x8] sm:$0xff]  }
 0x116   : > { %v725_v54 = vpop.f32.mrb[2].mxu0 }
 0x117   : > { %v726_v55 = vpop.f32.mrb[3].mxu0  ;;  %v908_v57 = vmul.f32 1.442695, %v907_v56  ;;  %v2078_v54 = vld [vmem:[%s2409_s25 + $0x50] sm:$0xff]   ;;  %v2080_v56 = vld [vmem:[%s2409_s25 + $0x58] sm:$0xff]  }
 0x118   : > { %v2079_v55 = vld [vmem:[%s2409_s25 + $0x10] sm:$0xff]  }
 0x119   : > { %2090 = vpow2.f32 %v908_v57  ;;  %v2373_v10 = vpop.f32.mrb[0].mxu1  ;;  %v2081_v57 = vld [vmem:[%s2409_s25 + $0x18] sm:$0xff]  }
 0x11a   : > { %v1871_v11 = vpop.f32.mrb[1].mxu1 }
 0x11b   : > { %v765_v12 = vpop.f32.mrb[2].mxu1 }
 0x11c   : > { %v1872_v13 = vpop.f32.mrb[3].mxu1 }
 0x123   : > { %v2091_v2 = vpop.eup %2090 }
 0x124   : > { %v910_v6 = vsel %vm905_vm1, %v906_v3, %v2091_v2 }
 0x134   : > { %v898_v58 = vpop.f32.mrb[4].mxu0 }
 0x135   : > { %v913_v59 = vmin.f32 %v898_v58, 0.0  ;;  %v900_v60 = vpop.f32.mrb[5].mxu0  ;;  %v912_v4 = vadd.f32 1.0, %v898_v58  ;;  %vm911_vm2 = vcmp.gt.f32.partialorder %v898_v58, 0.0  ;;  %v2082_v58 = vld [vmem:[%s2409_s25 + $0x60] sm:$0xff]  }
 0x136   : > { %v902_v61 = vpop.f32.mrb[6].mxu0 }
 0x137   : > { %v914_v62 = vmul.f32 1.442695, %v913_v59  ;;  %v903_v63 = vpop.f32.mrb[7].mxu0  ;;  %v2083_v59 = vld [vmem:[%s2409_s25 + $0x20] sm:$0xff]  }
 0x139   : > { %2092 = vpow2.f32 %v914_v62 }
 0x143   : > { %v2093_v5 = vpop.eup %2092 }
 0x144   : > { %v916_v7 = vsel %vm911_vm2, %v912_v4, %v2093_v5 }
 0x145   : > { %v917_v8 = vmul.f32 %v916_v7, %v910_v6 }
 0x147   : > { %v918_v9 = vpack.c.bf16 %v917_v8, %v917_v8 }
 0x149   : > { %1890 = vmatmul.mubr.bf16.vlgmr.msra.gmra.mrb[4].mxu1 %v918_v9 }
 0x14a   : > { %1914 = vmatpush3.bf16.msra.mxu1 %v2278_v44  ;;  %1929 = vmatprep.mubr.msk.bf16.mxu1 %vm2125_vm0, %v2124_v1 }
 0x14b   : > { %1915 = vmatprep.subr.bf16.mxu1 %v2124_v1 }
 0x14e   : > { %1916 = vmatpush3.bf16.msra.mxu1 %v2292_v45 }
 0x14f   : > { %1917 = vmatprep.subr.bf16.mxu1 %v2124_v1 }
 0x152   : > { %1918 = vmatpush3.bf16.msra.mxu1 %v2303_v46 }
 0x153   : > { %1919 = vmatprep.subr.bf16.mxu1 %v2124_v1 }
 0x156   : > { %1920 = vmatpush3.bf16.msra.mxu1 %v2313_v47 }
 0x157   : > { %1921 = vmatprep.subr.bf16.mxu1 %v2124_v1 }
 0x15a   : > { %1922 = vmatpush3.bf16.msra.mxu1 %v2322_v48 }
 0x15b   : > { %1923 = vmatprep.subr.bf16.mxu1 %v2124_v1 }
 0x15e   : > { %1924 = vmatpush3.bf16.msra.mxu1 %v2331_v49 }
 0x15f   : > { %1925 = vmatprep.subr.bf16.mxu1 %v2124_v1 }
 0x162   : > { %1926 = vmatpush3.bf16.msra.mxu1 %v2340_v50 }
 0x163   : > { %1927 = vmatprep.subr.bf16.mxu1 %v2124_v1 }
 0x166   : > { %1928 = vmatpush3.bf16.msra.mxu1 %v2349_v51 }
 0x167   : > { %1813 = vmatprep.subr.bf16.mxu1 %v2074_v41 }
 0x21c   : > { %v1001_v15 = vpop.f32.mrb[4].mxu1 }
 0x21d   : > { %v1007_v16 = vadd.f32 1e-06, %v1001_v15  ;;  %v1891_v17 = vpop.f32.mrb[5].mxu1 }
 0x21e   : > { %v1004_v18 = vpop.f32.mrb[6].mxu1 }
 0x21f   : > { %2094 = vrcp.f32 %v1007_v16  ;;  %v1892_v19 = vpop.f32.mrb[7].mxu1  ;;  %v2085_v18 = vld [vmem:[%s2409_s25 + $0x28] sm:$0xff]  }
 0x220   : > { %v2086_v19 = vld [vmem:[%s2409_s25 + $0x70] sm:$0xff]  }
 0x229   : > { %v2095_v20 = vpop.eup %2094 }
 0x22a   : > { %v1009_v21 = vmul.f32 %v2095_v20, %v1001_v15  ;;  %v2087_v20 = vld [vmem:[%s2409_s25 + $0x30] sm:$0xff]  }
 0x22c   : > { %v2382_v23 = vmul.f32 %v1009_v21, %v900_v60  ;;  %v2084_v60 = vld [vmem:[%s2409_s25 + $0x68] sm:$0xff]   ;;  %v2088_v21 = vld [vmem:[%s2409_s25 + $0x78] sm:$0xff]  }
 0x22e   : > { %v1011_v25 = vpack.c.bf16 %v2382_v23, %v2382_v23  ;;  %v1052_v26 = vmul.f32 %v2382_v23, %v2382_v23 }
 0x230   : > { %1910 = vmatmul.mubr.bf16.vlgmr.msra.gmra.mrb[8].mxu0 %v1011_v25  ;;  %v1053_v28 = vpack.c.bf16 %v1052_v26, %v1052_v26 }
 0x231   : > { %1201 = vmatpush1.bf16.msra.mxu0 %v2050_v24  ;;  %1232 = vmatprep.mubr.bf16.mxu0 %v2123_v0  ;;  %v2065_v0 = vld [vmem:[%s2379_s20 + $0x50] ss:$8 sps:$4 sm:$0xff]   ;;  %v1245_v24 = vlaneseq  ;;  %s507_s20 = scalar_lea.vmem %s2491_s10, %s1689_s16 }
 0x232   : > { %1930 = vmatmul.mubr.bf16.vlgmr.msra.gmra.mrb[8].mxu1 %v1053_v28  ;;  %1202 = vmatprep.subr.bf16.mxu0 %v2055_v27  ;;  %v1243_v27 = vld [vmem:[%s496_s11] sm:$0x3] }
 0x233   : > { %1814 = vmatpush3.bf16.msra.mxu1 %v2075_v42  ;;  %v1246_v25 = vshrl.u32 %v1245_v24, 7 }
 0x234   : > { %1815 = vmatprep.subr.bf16.mxu1 %v2076_v43 }
 0x235   : > { %1203 = vmatpush1.bf16.msra.mxu0 %v2053_v29  ;;  %v1247_v26 = vsub.s32 0, %v1246_v25  ;;  %v1251_v28 = vsub.s32 1, %v1246_v25 }
 0x236   : > { %1204 = vmatprep.subr.bf16.mxu0 %v2058_v30 }
 0x237   : > { %1816 = vmatpush3.bf16.msra.mxu1 %v2077_v52  ;;  %v1248_v29 = vrot.slane %v1243_v27, %v1247_v26 }
 0x238   : > { %1817 = vmatprep.subr.bf16.mxu1 %v2078_v54 }
 0x239   : > { %1205 = vmatpush1.bf16.msra.mxu0 %v2056_v31  ;;  %v1252_v31 = vrot.slane %v1243_v27, %v1251_v28 }
 0x23a   : > { %1206 = vmatprep.subr.bf16.mxu0 %v2061_v32 }
 0x23b   : > { %1818 = vmatpush3.bf16.msra.mxu1 %v2079_v55 }
 0x23c   : > { %1819 = vmatprep.subr.bf16.mxu1 %v2080_v56 }
 0x23d   : > { %1207 = vmatpush1.bf16.msra.mxu0 %v2059_v33 }
 0x23e   : > { %1208 = vmatprep.subr.bf16.mxu0 %v2064_v34 }
 0x23f   : > { %1820 = vmatpush3.bf16.msra.mxu1 %v2081_v57 }
 0x240   : > { %1821 = vmatprep.subr.bf16.mxu1 %v2082_v58 }
 0x241   : > { %1209 = vmatpush1.bf16.msra.mxu0 %v2062_v35 }
 0x242   : > { %1210 = vmatprep.subr.bf16.mxu0 %v2067_v36 }
 0x243   : > { %1822 = vmatpush3.bf16.msra.mxu1 %v2083_v59 }
 0x244   : > { %1823 = vmatprep.subr.bf16.mxu1 %v2084_v60 }
 0x245   : > { %1211 = vmatpush1.bf16.msra.mxu0 %v2065_v0 }
 0x246   : > { %1212 = vmatprep.subr.bf16.mxu0 %v2070_v37 }
 0x247   : > { %1824 = vmatpush3.bf16.msra.mxu1 %v2085_v18 }
 0x248   : > { %1825 = vmatprep.subr.bf16.mxu1 %v2086_v19 }
 0x249   : > { %1213 = vmatpush1.bf16.msra.mxu0 %v2068_v38 }
 0x24a   : > { %1214 = vmatprep.subr.bf16.mxu0 %v2073_v39 }
 0x24b   : > { %1826 = vmatpush3.bf16.msra.mxu1 %v2087_v20 }
 0x24c   : > { %1827 = vmatprep.subr.bf16.mxu1 %v2088_v21 }
 0x24d   : > { %1215 = vmatpush1.bf16.msra.mxu0 %v2071_v40 }
 0x24e   : > { %1933 = vmatprep.subr.bf16.mxu0 %v2124_v1 }
 0x303   : > { %v1046_v61 = vpop.f32.mrb[8].mxu0 }
 0x304   : > { %v1094_v62 = vmul.f32 0.03125, %v1046_v61  ;;  %v1911_v63 = vpop.f32.mrb[9].mxu0 }
 0x305   : > { %v1049_v2 = vpop.f32.mrb[10].mxu0  ;;  %v1088_v3 = vpop.f32.mrb[8].mxu1 }
 0x306   : > { %v1096_v4 = vmul.f32 %v1094_v62, %v1094_v62  ;;  %v1095_v5 = vmul.f32 0.03125, %v1088_v3  ;;  %v1912_v6 = vpop.f32.mrb[11].mxu0  ;;  %v1931_v7 = vpop.f32.mrb[9].mxu1  ;;  %v1099_v14 = vsub.f32 %v2382_v23, %v1094_v62  ;;  %v2089_v23 = vld [vmem:[%s2409_s25 + $0x38] sm:$0xff]   ;;  %v1770_v2 = vld [vmem:[%s502_s15] ss:$0 sm:$0xff] }
 0x307   : > { %v1091_v8 = vpop.f32.mrb[10].mxu1  ;;  %1828 = vmatpush3.bf16.msra.mxu1 %v2089_v23 }
 0x308   : > { %v1097_v9 = vsub.f32 %v1095_v5, %v1096_v4  ;;  %v1932_v11 = vpop.f32.mrb[11].mxu1  ;;  %1953 = vmatprep.subr.bf16.mxu1 %v2124_v1  ;;  %v1771_v4 = vld [vmem:[%s502_s15 + $0x1] ss:$0 sm:$0xff]  ;;  %v1533_v5 = vunpack.c.l.bf16 %v2240_v22 }
 0x30a   : > { %v1098_v12 = vmax.f32 %v1097_v9, 0.0 }
 0x30c   : > { %v1100_v13 = vadd.f32 1e-05, %v1098_v12 }
 0x30e   : > { %2096 = vrsqrt.f32 %v1100_v13 }
 0x318   : > { %v2097_v15 = vpop.eup %2096 }
 0x319   : > { %v1102_v16 = vmul.f32 %v2097_v15, %v1099_v14 }
 0x31b   : > { %v1103_v17 = vpack.c.bf16 %v1102_v16, %v1102_v16 }
 0x31d   : > { %1233 = vmatmul.mubr.bf16.vlgmr.msra.gmra.mrb[12].mxu0 %v1103_v17 }
 0x31e   : > { %1934 = vmatpush3.bf16.msra.mxu0 %v2278_v44  ;;  %1949 = vmatprep.mubr.msk.bf16.mxu0 %vm2125_vm0, %v2124_v1 }
 0x31f   : > { %1935 = vmatprep.subr.bf16.mxu0 %v2124_v1 }
 0x322   : > { %1936 = vmatpush3.bf16.msra.mxu0 %v2292_v45 }
 0x323   : > { %1937 = vmatprep.subr.bf16.mxu0 %v2124_v1 }
 0x326   : > { %1938 = vmatpush3.bf16.msra.mxu0 %v2303_v46 }
 0x327   : > { %1939 = vmatprep.subr.bf16.mxu0 %v2124_v1 }
 0x32a   : > { %1940 = vmatpush3.bf16.msra.mxu0 %v2313_v47 }
 0x32b   : > { %1941 = vmatprep.subr.bf16.mxu0 %v2124_v1 }
 0x32e   : > { %1942 = vmatpush3.bf16.msra.mxu0 %v2322_v48 }
 0x32f   : > { %1943 = vmatprep.subr.bf16.mxu0 %v2124_v1 }
 0x332   : > { %1944 = vmatpush3.bf16.msra.mxu0 %v2331_v49 }
 0x333   : > { %1945 = vmatprep.subr.bf16.mxu0 %v2124_v1 }
 0x336   : > { %1946 = vmatpush3.bf16.msra.mxu0 %v2340_v50 }
 0x337   : > { %1947 = vmatprep.subr.bf16.mxu0 %v2124_v1 }
 0x33a   : > { %1948 = vmatpush3.bf16.msra.mxu0 %v2349_v51 }
 0x3f0   : > { %v1234_v30 = vpop.f32.mrb[12].mxu0 }
 0x3f1   : > { %v1241_v32 = vadd.f32 %v1234_v30, %v2354_v53  ;;  %v1236_v33 = vpop.f32.mrb[13].mxu0 }
 0x3f2   : > { %v1242_v34 = vadd.f32 %v1236_v33, %v2373_v10  ;;  %v1238_v35 = vpop.f32.mrb[14].mxu0 }
 0x3f3   : > { %v1255_v0 = vadd.f32 %v1248_v29, %v1241_v32  ;;  %v1239_v36 = vpop.f32.mrb[15].mxu0 }
 0x3f4   : > { %v1256_v37 = vadd.f32 %v1252_v31, %v1242_v34 }
 0x3f5   : > { %v1257_v38 = vmax.f32 %v1255_v0, 0.0 }
 0x3f6   : > { %v1258_v39 = vmax.f32 %v1256_v37, 0.0 }
 0x3f7   : > { %v1259_v41 = vpack.c.bf16 %v1257_v38, %v1257_v38 }
 0x3f8   : > { %v1260_v40 = vpack.c.bf16 %v1258_v39, %v1258_v39 }
 0x3fa   : > { %1421 = vmatprep.mubr.bf16.mxu1 %v1260_v40 }
 0x3fb   : > { %1422 = vmatmul.mubr.bf16.vlgmr.msra.gmra.mrb[12].mxu1 %v1259_v41 }
 0x3fc   : > { %1954 = vmatpush3.bf16.msra.mxu1 %v2278_v44  ;;  %1969 = vmatprep.mubr.msk.bf16.mxu1 %vm2125_vm0, %v2124_v1 }
 0x3fd   : > { %1955 = vmatprep.subr.bf16.mxu1 %v2124_v1 }
 0x400   : > { %1956 = vmatpush3.bf16.msra.mxu1 %v2292_v45 }
 0x401   : > { %1957 = vmatprep.subr.bf16.mxu1 %v2124_v1 }
 0x404   : > { %1958 = vmatpush3.bf16.msra.mxu1 %v2303_v46 }
 0x405   : > { %1959 = vmatprep.subr.bf16.mxu1 %v2124_v1 }
 0x408   : > { %1960 = vmatpush3.bf16.msra.mxu1 %v2313_v47 }
 0x409   : > { %1961 = vmatprep.subr.bf16.mxu1 %v2124_v1 }
 0x40c   : > { %1962 = vmatpush3.bf16.msra.mxu1 %v2322_v48 }
 0x40d   : > { %1963 = vmatprep.subr.bf16.mxu1 %v2124_v1 }
 0x410   : > { %1964 = vmatpush3.bf16.msra.mxu1 %v2331_v49 }
 0x411   : > { %1965 = vmatprep.subr.bf16.mxu1 %v2124_v1 }
 0x414   : > { %1966 = vmatpush3.bf16.msra.mxu1 %v2340_v50 }
 0x415   : > { %1967 = vmatprep.subr.bf16.mxu1 %v2124_v1 }
 0x418   : > { %1968 = vmatpush3.bf16.msra.mxu1 %v2349_v51 }
 0x4ce   : > { %v1829_v44 = vpop.f32.mrb[12].mxu1 }
 0x4cf   : > { %v1830_v45 = vpop.f32.mrb[13].mxu1 }
 0x4d0   : > { %v1831_v46 = vadd.f32 %v1830_v45, %v1829_v44  ;;  %v1832_v47 = vpop.f32.mrb[14].mxu1 }
 0x4d1   : > { %v1833_v53 = vpop.f32.mrb[15].mxu1 }
 0x4d2   : > { %v1429_v10 = vpack.c.bf16 %v1831_v46, %v1831_v46  ;;  %v1470_v48 = vmul.f32 %v1831_v46, %v1831_v46 }
 0x4d4   : > { %v1471_v42 = vpack.c.bf16 %v1470_v48, %v1470_v48  ;;  %1950 = vmatmul.mubr.bf16.vlgmr.msra.gmra.mrb[16].mxu0 %v1429_v10 }
 0x4d6   : > { %1970 = vmatmul.mubr.bf16.vlgmr.msra.gmra.mrb[16].mxu1 %v1471_v42 }
 0x5a7   : > { %v1464_v49 = vpop.f32.mrb[16].mxu0 }
 0x5a8   : > { %v1512_v43 = vmul.f32 0.03125, %v1464_v49  ;;  %v1951_v52 = vpop.f32.mrb[17].mxu0 }
 0x5a9   : > { %v1467_v54 = vpop.f32.mrb[18].mxu0  ;;  %v1506_v50 = vpop.f32.mrb[16].mxu1 }
 0x5aa   : > { %v1514_v55 = vmul.f32 %v1512_v43, %v1512_v43  ;;  %v1513_v1 = vmul.f32 0.03125, %v1506_v50  ;;  %v1952_v56 = vpop.f32.mrb[19].mxu0  ;;  %v1971_v51 = vpop.f32.mrb[17].mxu1  ;;  %v1517_v62 = vsub.f32 %v1831_v46, %v1512_v43 }
 0x5ab   : > { %v1509_v57 = vpop.f32.mrb[18].mxu1 }
 0x5ac   : > { %v1515_v58 = vsub.f32 %v1513_v1, %v1514_v55  ;;  %v1972_v59 = vpop.f32.mrb[19].mxu1 }
 0x5ae   : > { %v1516_v60 = vmax.f32 %v1515_v58, 0.0 }
 0x5b0   : > { %v1518_v61 = vadd.f32 1e-05, %v1516_v60 }
 0x5b2   : > { %2098 = vrsqrt.f32 %v1518_v61 }
 0x5bc   : > { %v2099_v63 = vpop.eup %2098 }
 0x5bd   : > { %v1520_v3 = vmul.f32 %v2099_v63, %v1517_v62 }
 0x5bf   : > { %v1526_v6 = vmul.f32 %v1770_v2, %v1520_v3 }
 0x5c1   : > { %v1532_v7 = vadd.f32 %v1771_v4, %v1526_v6 }
 0x5c3   : > { %v1534_v8 = vadd.f32 %v1533_v5, %v1532_v7 }
 0x5c5   : > { %1535 = vst [vmem:[%s507_s20] sm:$0xff] %v1534_v8 }
 0x5c6 PF: > { %s26_s18 = sadd.s32 1, %s2120_s18  }
 0x5c7   : > { %p23_p1 = scmp.ge.s32.totalorder %s26_s18, 4  }
 0x5c9   :  { %25 = sbr.rel (!%p23_p1) target bundleno = 16 (0x10), region = 107 }

</bundles_post_ra>
